<compile_context>
chip_gen: v7x
topology: tpu7x:2x2x1
jax: 0.10.0
libtpu: 0.0.40
codegen_flags: <defaults>
</compile_context>

<pallas_src>
import jax
import jax.numpy as jnp
from jax import lax
from jax.experimental import pallas as pl
from jax.experimental.pallas import tpu as pltpu


def spatial_attention(x_nchw, weight_oihw, bias, *, kernel_size=7, batch_blocks=1):
    """SpatialAttention.forward. x: (N, C, H, W); weight: (1, 2, K, K); bias: (1,)."""
    N, C, H, W = x_nchw.shape
    K = kernel_size
    P = K // 2
    HW = H * W
    KK = K * K
    assert N % batch_blocks == 0
    bn = N // batch_blocks          # images handled per grid step
    R = 2 * bn                      # stacked (avg, max) map rows per step
    PADL = P * W + P                # flat zero-extension needed on each side

    # ---- wrapper-side prep (all tiny / free metadata reshapes) ----
    x_flat = x_nchw.reshape(N, C, HW)                                 # lane-dense view
    w2 = weight_oihw.reshape(2, KK).astype(jnp.float32)               # row0=avg, row1=max taps
    wmat = jnp.repeat(w2, bn, axis=0)                                 # (R, KK): [avg]*bn+[max]*bn
    b_flat = bias.reshape(1).astype(jnp.float32)

    # Per-dx column-validity masks: flat position p is valid for horizontal tap dx
    # iff 0 <= (p % W) + dx - P < W (suppresses row wrap-around of the flat shift).
    col = jnp.arange(HW, dtype=jnp.int32) % W                          # (HW,)
    offs = jnp.arange(K, dtype=jnp.int32)[:, None] - P                 # (K, 1)
    colmask = ((col[None, :] + offs >= 0) &
               (col[None, :] + offs < W)).astype(jnp.float32)          # (K, HW)

    def kernel(x_ref, w_ref, m_ref, b_ref, o_ref):
        x = x_ref[...]                                                 # (bn, C, HW)

        # --- channel mean / max, lane-dense ---
        avg = jnp.sum(x, axis=1) * (1.0 / C)                           # (bn, HW)
        mx = jnp.max(x, axis=1)                                        # (bn, HW)
        maps = jnp.concatenate([avg, mx], axis=0)                      # (R, HW)

        # --- value-level zero extension of the flat maps (no scratch round-trip) ---
        zpad = jnp.zeros((R, PADL), jnp.float32)
        mpad = jnp.concatenate([zpad, maps, zpad], axis=1)             # (R, HW + 2*PADL)

        # --- 7x7 conv (2 -> 1 channel) as 49 constant-lane-offset shifted FMAs on
        #     the stacked maps; weights broadcast from a (R, 1) column per tap ---
        w_all = w_ref[...]                                             # (R, KK)
        masks = m_ref[...]                                             # (K, HW)
        acc = jnp.zeros((R, HW), jnp.float32)
        for dx in range(K):
            psum = None
            for dy in range(K):
                t = dy * K + dx                                        # PyTorch tap index
                s = PADL + (dy - P) * W + (dx - P)                     # static lane offset
                win = mpad[:, s:s + HW]                                # (R, HW)
                term = win * w_all[:, t:t + 1]                         # per-row tap weight
                psum = term if psum is None else psum + term
            acc = acc + psum * masks[dx:dx + 1, :]                     # kill wrapped columns

        # --- reduce stacked (avg, max) contributions; bias + sigmoid epilogue ---
        conv = acc[:bn] + acc[bn:]                                     # (bn, HW)
        attn = 1.0 / (1.0 + jnp.exp(-(conv + b_ref[0])))               # (bn, HW)

        # --- broadcast-multiply over channels; lane-dense full-width store ---
        o_ref[...] = (x * attn[:, None, :]).astype(o_ref.dtype)

    out = pl.pallas_call(
        kernel,
        out_shape=jax.ShapeDtypeStruct((N, C, HW), x_nchw.dtype),
        grid=(batch_blocks,),
        in_specs=[
            pl.BlockSpec((bn, C, HW), lambda i: (i, 0, 0)),            # x, lane-dense
            pl.BlockSpec((R, KK), lambda i: (0, 0)),                   # per-tap weight table
            pl.BlockSpec((K, HW), lambda i: (0, 0)),                   # per-dx column masks
            pl.BlockSpec(memory_space=pltpu.MemorySpace.SMEM),         # bias scalar
        ],
        out_specs=pl.BlockSpec((bn, C, HW), lambda i: (i, 0, 0)),
        compiler_params=pltpu.CompilerParams(
            dimension_semantics=("parallel",)),
    )(x_flat, wmat, colmask, b_flat)

    return out.reshape(N, C, H, W)


def _reference(x, weight, bias, kernel_size=7):
    """Pure-JAX reference mirroring the PyTorch module."""
    P = kernel_size // 2
    avg_out = jnp.mean(x, axis=1, keepdims=True)
    max_out = jnp.max(x, axis=1, keepdims=True)
    attn_in = jnp.concatenate([avg_out, max_out], axis=1)
    conv = lax.conv_general_dilated(
        attn_in, weight, window_strides=(1, 1),
        padding=((P, P), (P, P)),
        dimension_numbers=("NCHW", "OIHW", "NCHW"),
        precision=lax.Precision.HIGHEST)
    attn = jax.nn.sigmoid(conv + bias.reshape(1, 1, 1, 1))
    return x * attn


if __name__ == "__main__":
    N, C, H, W = 2, 4, 16, 16
    K = 7

    root = jax.random.PRNGKey(0)
    kx, kw, kb = jax.random.split(root, 3)

    x = jax.random.normal(kx, (N, C, H, W), dtype=jnp.float32)
    # Deterministic init mimicking PyTorch Conv2d(2, 1, 7) defaults.
    fan_in = 2 * K * K
    bound = 1.0 / float(fan_in) ** 0.5
    weight = jax.random.uniform(kw, (1, 2, K, K), minval=-bound, maxval=bound,
                                dtype=jnp.float32)
    bias = jax.random.uniform(kb, (1,), minval=-bound, maxval=bound,
                              dtype=jnp.float32)

    ref = _reference(x, weight, bias)

    # Default path: one grid step (best on single-TensorCore v5e / v6e).
    out = jax.jit(spatial_attention)(x, weight, bias)
    jax.block_until_ready(out)
    assert out.shape == (N, C, H, W), out.shape
    assert out.dtype == jnp.float32
    max_err = float(jnp.max(jnp.abs(out - ref)))
    assert max_err < 1e-3, f"max abs error {max_err}"

    # Batch-parallel path: grid over N with "parallel" semantics, so the two
    # TensorCores of a v7x chip each take one image. Same kernel, different blocking.
    out2 = jax.jit(lambda a, b, c: spatial_attention(a, b, c, batch_blocks=2))(
        x, weight, bias)
    jax.block_until_ready(out2)
    max_err2 = float(jnp.max(jnp.abs(out2 - ref)))
    assert max_err2 < 1e-3, f"max abs error (batch grid) {max_err2}"

    print("KERNEL_OK")
</pallas_src>

<mosaic_0001>
module attributes {stable_mosaic.version = 11 : i64} {
  func.func @kernel(%arg0: i32, %arg1: memref<2x4x256xf32, #tpu.memory_space<vmem>>, %arg2: memref<4x49xf32, #tpu.memory_space<vmem>>, %arg3: memref<7x256xf32, #tpu.memory_space<vmem>>, %arg4: memref<1xf32, #tpu.memory_space<smem>>, %arg5: memref<2x4x256xf32, #tpu.memory_space<vmem>>) attributes {dimension_semantics = [#tpu.dimension_semantics<parallel>], iteration_bounds = array<i64: 1>, scalar_prefetch = 0 : i64, scratch_operands = 0 : i64, tpu.core_type = #tpu.core_type<tc>, window_params = [{transform_indices = @transform_0, window_bounds = array<i64: 2, 4, 256>}, {pipeline_mode = #tpu.pipeline_mode<synchronous>, transform_indices = @transform_1, window_bounds = array<i64: 4, 49>}, {pipeline_mode = #tpu.pipeline_mode<synchronous>, transform_indices = @transform_2, window_bounds = array<i64: 7, 256>}, {transform_indices = @transform_3, window_bounds = array<i64: 1>}, {transform_indices = @transform_4, window_bounds = array<i64: 2, 4, 256>}]} {
    %c0 = arith.constant 0 : index
    %c0_0 = arith.constant 0 : index
    %c0_1 = arith.constant 0 : index
    %0 = vector.load %arg1[%c0, %c0_0, %c0_1] : memref<2x4x256xf32, #tpu.memory_space<vmem>>, vector<2x4x256xf32>
    %cst = arith.constant dense<0.000000e+00> : vector<2x256xf32>
    %1 = vector.multi_reduction <add>, %0, %cst [1] : vector<2x4x256xf32> to vector<2x256xf32>
    %cst_2 = arith.constant 2.500000e-01 : f32
    %2 = vector.broadcast %cst_2 : f32 to vector<2x256xf32>
    %3 = arith.mulf %1, %2 : vector<2x256xf32>
    %cst_3 = arith.constant dense<0xFF800000> : vector<2x256xf32>
    %4 = vector.multi_reduction <maximumf>, %0, %cst_3 [1] : vector<2x4x256xf32> to vector<2x256xf32>
    %5 = tpu.concatenate %3, %4 in 0 : vector<2x256xf32>, vector<2x256xf32> -> vector<4x256xf32>
    %cst_4 = arith.constant 0.000000e+00 : f32
    %6 = vector.broadcast %cst_4 : f32 to vector<4x51xf32>
    %7 = tpu.concatenate %6, %5, %6 in 1 : vector<4x51xf32>, vector<4x256xf32>, vector<4x51xf32> -> vector<4x358xf32>
    %c0_5 = arith.constant 0 : index
    %c0_6 = arith.constant 0 : index
    %8 = vector.load %arg2[%c0_5, %c0_6] : memref<4x49xf32, #tpu.memory_space<vmem>>, vector<4x49xf32>
    %c0_7 = arith.constant 0 : index
    %c0_8 = arith.constant 0 : index
    %9 = vector.load %arg3[%c0_7, %c0_8] : memref<7x256xf32, #tpu.memory_space<vmem>>, vector<7x256xf32>
    %cst_9 = arith.constant 0.000000e+00 : f32
    %10 = vector.broadcast %cst_9 : f32 to vector<4x256xf32>
    %11 = vector.extract_strided_slice %7 {offsets = [0, 0], sizes = [4, 256], strides = [1, 1]} : vector<4x358xf32> to vector<4x256xf32>
    %12 = vector.extract_strided_slice %8 {offsets = [0, 0], sizes = [4, 1], strides = [1, 1]} : vector<4x49xf32> to vector<4x1xf32>
    %13 = vector.broadcast %12 : vector<4x1xf32> to vector<4x256xf32>
    %14 = arith.mulf %11, %13 : vector<4x256xf32>
    %15 = vector.extract_strided_slice %7 {offsets = [0, 16], sizes = [4, 256], strides = [1, 1]} : vector<4x358xf32> to vector<4x256xf32>
    %16 = vector.extract_strided_slice %8 {offsets = [0, 7], sizes = [4, 1], strides = [1, 1]} : vector<4x49xf32> to vector<4x1xf32>
    %17 = vector.broadcast %16 : vector<4x1xf32> to vector<4x256xf32>
    %18 = arith.mulf %15, %17 : vector<4x256xf32>
    %19 = arith.addf %14, %18 : vector<4x256xf32>
    %20 = vector.extract_strided_slice %7 {offsets = [0, 32], sizes = [4, 256], strides = [1, 1]} : vector<4x358xf32> to vector<4x256xf32>
    %21 = vector.extract_strided_slice %8 {offsets = [0, 14], sizes = [4, 1], strides = [1, 1]} : vector<4x49xf32> to vector<4x1xf32>
    %22 = vector.broadcast %21 : vector<4x1xf32> to vector<4x256xf32>
    %23 = arith.mulf %20, %22 : vector<4x256xf32>
    %24 = arith.addf %19, %23 : vector<4x256xf32>
    %25 = vector.extract_strided_slice %7 {offsets = [0, 48], sizes = [4, 256], strides = [1, 1]} : vector<4x358xf32> to vector<4x256xf32>
    %26 = vector.extract_strided_slice %8 {offsets = [0, 21], sizes = [4, 1], strides = [1, 1]} : vector<4x49xf32> to vector<4x1xf32>
    %27 = vector.broadcast %26 : vector<4x1xf32> to vector<4x256xf32>
    %28 = arith.mulf %25, %27 : vector<4x256xf32>
    %29 = arith.addf %24, %28 : vector<4x256xf32>
    %30 = vector.extract_strided_slice %7 {offsets = [0, 64], sizes = [4, 256], strides = [1, 1]} : vector<4x358xf32> to vector<4x256xf32>
    %31 = vector.extract_strided_slice %8 {offsets = [0, 28], sizes = [4, 1], strides = [1, 1]} : vector<4x49xf32> to vector<4x1xf32>
    %32 = vector.broadcast %31 : vector<4x1xf32> to vector<4x256xf32>
    %33 = arith.mulf %30, %32 : vector<4x256xf32>
    %34 = arith.addf %29, %33 : vector<4x256xf32>
    %35 = vector.extract_strided_slice %7 {offsets = [0, 80], sizes = [4, 256], strides = [1, 1]} : vector<4x358xf32> to vector<4x256xf32>
    %36 = vector.extract_strided_slice %8 {offsets = [0, 35], sizes = [4, 1], strides = [1, 1]} : vector<4x49xf32> to vector<4x1xf32>
    %37 = vector.broadcast %36 : vector<4x1xf32> to vector<4x256xf32>
    %38 = arith.mulf %35, %37 : vector<4x256xf32>
    %39 = arith.addf %34, %38 : vector<4x256xf32>
    %40 = vector.extract_strided_slice %7 {offsets = [0, 96], sizes = [4, 256], strides = [1, 1]} : vector<4x358xf32> to vector<4x256xf32>
    %41 = vector.extract_strided_slice %8 {offsets = [0, 42], sizes = [4, 1], strides = [1, 1]} : vector<4x49xf32> to vector<4x1xf32>
    %42 = vector.broadcast %41 : vector<4x1xf32> to vector<4x256xf32>
    %43 = arith.mulf %40, %42 : vector<4x256xf32>
    %44 = arith.addf %39, %43 : vector<4x256xf32>
    %45 = vector.extract_strided_slice %9 {offsets = [0, 0], sizes = [1, 256], strides = [1, 1]} : vector<7x256xf32> to vector<1x256xf32>
    %46 = vector.broadcast %45 : vector<1x256xf32> to vector<4x256xf32>
    %47 = arith.mulf %44, %46 : vector<4x256xf32>
    %48 = arith.addf %10, %47 : vector<4x256xf32>
    %49 = vector.extract_strided_slice %7 {offsets = [0, 1], sizes = [4, 256], strides = [1, 1]} : vector<4x358xf32> to vector<4x256xf32>
    %50 = vector.extract_strided_slice %8 {offsets = [0, 1], sizes = [4, 1], strides = [1, 1]} : vector<4x49xf32> to vector<4x1xf32>
    %51 = vector.broadcast %50 : vector<4x1xf32> to vector<4x256xf32>
    %52 = arith.mulf %49, %51 : vector<4x256xf32>
    %53 = vector.extract_strided_slice %7 {offsets = [0, 17], sizes = [4, 256], strides = [1, 1]} : vector<4x358xf32> to vector<4x256xf32>
    %54 = vector.extract_strided_slice %8 {offsets = [0, 8], sizes = [4, 1], strides = [1, 1]} : vector<4x49xf32> to vector<4x1xf32>
    %55 = vector.broadcast %54 : vector<4x1xf32> to vector<4x256xf32>
    %56 = arith.mulf %53, %55 : vector<4x256xf32>
    %57 = arith.addf %52, %56 : vector<4x256xf32>
    %58 = vector.extract_strided_slice %7 {offsets = [0, 33], sizes = [4, 256], strides = [1, 1]} : vector<4x358xf32> to vector<4x256xf32>
    %59 = vector.extract_strided_slice %8 {offsets = [0, 15], sizes = [4, 1], strides = [1, 1]} : vector<4x49xf32> to vector<4x1xf32>
    %60 = vector.broadcast %59 : vector<4x1xf32> to vector<4x256xf32>
    %61 = arith.mulf %58, %60 : vector<4x256xf32>
    %62 = arith.addf %57, %61 : vector<4x256xf32>
    %63 = vector.extract_strided_slice %7 {offsets = [0, 49], sizes = [4, 256], strides = [1, 1]} : vector<4x358xf32> to vector<4x256xf32>
    %64 = vector.extract_strided_slice %8 {offsets = [0, 22], sizes = [4, 1], strides = [1, 1]} : vector<4x49xf32> to vector<4x1xf32>
    %65 = vector.broadcast %64 : vector<4x1xf32> to vector<4x256xf32>
    %66 = arith.mulf %63, %65 : vector<4x256xf32>
    %67 = arith.addf %62, %66 : vector<4x256xf32>
    %68 = vector.extract_strided_slice %7 {offsets = [0, 65], sizes = [4, 256], strides = [1, 1]} : vector<4x358xf32> to vector<4x256xf32>
    %69 = vector.extract_strided_slice %8 {offsets = [0, 29], sizes = [4, 1], strides = [1, 1]} : vector<4x49xf32> to vector<4x1xf32>
    %70 = vector.broadcast %69 : vector<4x1xf32> to vector<4x256xf32>
    %71 = arith.mulf %68, %70 : vector<4x256xf32>
    %72 = arith.addf %67, %71 : vector<4x256xf32>
    %73 = vector.extract_strided_slice %7 {offsets = [0, 81], sizes = [4, 256], strides = [1, 1]} : vector<4x358xf32> to vector<4x256xf32>
    %74 = vector.extract_strided_slice %8 {offsets = [0, 36], sizes = [4, 1], strides = [1, 1]} : vector<4x49xf32> to vector<4x1xf32>
    %75 = vector.broadcast %74 : vector<4x1xf32> to vector<4x256xf32>
    %76 = arith.mulf %73, %75 : vector<4x256xf32>
    %77 = arith.addf %72, %76 : vector<4x256xf32>
    %78 = vector.extract_strided_slice %7 {offsets = [0, 97], sizes = [4, 256], strides = [1, 1]} : vector<4x358xf32> to vector<4x256xf32>
    %79 = vector.extract_strided_slice %8 {offsets = [0, 43], sizes = [4, 1], strides = [1, 1]} : vector<4x49xf32> to vector<4x1xf32>
    %80 = vector.broadcast %79 : vector<4x1xf32> to vector<4x256xf32>
    %81 = arith.mulf %78, %80 : vector<4x256xf32>
    %82 = arith.addf %77, %81 : vector<4x256xf32>
    %83 = vector.extract_strided_slice %9 {offsets = [1, 0], sizes = [1, 256], strides = [1, 1]} : vector<7x256xf32> to vector<1x256xf32>
    %84 = vector.broadcast %83 : vector<1x256xf32> to vector<4x256xf32>
    %85 = arith.mulf %82, %84 : vector<4x256xf32>
    %86 = arith.addf %48, %85 : vector<4x256xf32>
    %87 = vector.extract_strided_slice %7 {offsets = [0, 2], sizes = [4, 256], strides = [1, 1]} : vector<4x358xf32> to vector<4x256xf32>
    %88 = vector.extract_strided_slice %8 {offsets = [0, 2], sizes = [4, 1], strides = [1, 1]} : vector<4x49xf32> to vector<4x1xf32>
    %89 = vector.broadcast %88 : vector<4x1xf32> to vector<4x256xf32>
    %90 = arith.mulf %87, %89 : vector<4x256xf32>
    %91 = vector.extract_strided_slice %7 {offsets = [0, 18], sizes = [4, 256], strides = [1, 1]} : vector<4x358xf32> to vector<4x256xf32>
    %92 = vector.extract_strided_slice %8 {offsets = [0, 9], sizes = [4, 1], strides = [1, 1]} : vector<4x49xf32> to vector<4x1xf32>
    %93 = vector.broadcast %92 : vector<4x1xf32> to vector<4x256xf32>
    %94 = arith.mulf %91, %93 : vector<4x256xf32>
    %95 = arith.addf %90, %94 : vector<4x256xf32>
    %96 = vector.extract_strided_slice %7 {offsets = [0, 34], sizes = [4, 256], strides = [1, 1]} : vector<4x358xf32> to vector<4x256xf32>
    %97 = vector.extract_strided_slice %8 {offsets = [0, 16], sizes = [4, 1], strides = [1, 1]} : vector<4x49xf32> to vector<4x1xf32>
    %98 = vector.broadcast %97 : vector<4x1xf32> to vector<4x256xf32>
    %99 = arith.mulf %96, %98 : vector<4x256xf32>
    %100 = arith.addf %95, %99 : vector<4x256xf32>
    %101 = vector.extract_strided_slice %7 {offsets = [0, 50], sizes = [4, 256], strides = [1, 1]} : vector<4x358xf32> to vector<4x256xf32>
    %102 = vector.extract_strided_slice %8 {offsets = [0, 23], sizes = [4, 1], strides = [1, 1]} : vector<4x49xf32> to vector<4x1xf32>
    %103 = vector.broadcast %102 : vector<4x1xf32> to vector<4x256xf32>
    %104 = arith.mulf %101, %103 : vector<4x256xf32>
    %105 = arith.addf %100, %104 : vector<4x256xf32>
    %106 = vector.extract_strided_slice %7 {offsets = [0, 66], sizes = [4, 256], strides = [1, 1]} : vector<4x358xf32> to vector<4x256xf32>
    %107 = vector.extract_strided_slice %8 {offsets = [0, 30], sizes = [4, 1], strides = [1, 1]} : vector<4x49xf32> to vector<4x1xf32>
    %108 = vector.broadcast %107 : vector<4x1xf32> to vector<4x256xf32>
    %109 = arith.mulf %106, %108 : vector<4x256xf32>
    %110 = arith.addf %105, %109 : vector<4x256xf32>
    %111 = vector.extract_strided_slice %7 {offsets = [0, 82], sizes = [4, 256], strides = [1, 1]} : vector<4x358xf32> to vector<4x256xf32>
    %112 = vector.extract_strided_slice %8 {offsets = [0, 37], sizes = [4, 1], strides = [1, 1]} : vector<4x49xf32> to vector<4x1xf32>
    %113 = vector.broadcast %112 : vector<4x1xf32> to vector<4x256xf32>
    %114 = arith.mulf %111, %113 : vector<4x256xf32>
    %115 = arith.addf %110, %114 : vector<4x256xf32>
    %116 = vector.extract_strided_slice %7 {offsets = [0, 98], sizes = [4, 256], strides = [1, 1]} : vector<4x358xf32> to vector<4x256xf32>
    %117 = vector.extract_strided_slice %8 {offsets = [0, 44], sizes = [4, 1], strides = [1, 1]} : vector<4x49xf32> to vector<4x1xf32>
    %118 = vector.broadcast %117 : vector<4x1xf32> to vector<4x256xf32>
    %119 = arith.mulf %116, %118 : vector<4x256xf32>
    %120 = arith.addf %115, %119 : vector<4x256xf32>
    %121 = vector.extract_strided_slice %9 {offsets = [2, 0], sizes = [1, 256], strides = [1, 1]} : vector<7x256xf32> to vector<1x256xf32>
    %122 = vector.broadcast %121 : vector<1x256xf32> to vector<4x256xf32>
    %123 = arith.mulf %120, %122 : vector<4x256xf32>
    %124 = arith.addf %86, %123 : vector<4x256xf32>
    %125 = vector.extract_strided_slice %7 {offsets = [0, 3], sizes = [4, 256], strides = [1, 1]} : vector<4x358xf32> to vector<4x256xf32>
    %126 = vector.extract_strided_slice %8 {offsets = [0, 3], sizes = [4, 1], strides = [1, 1]} : vector<4x49xf32> to vector<4x1xf32>
    %127 = vector.broadcast %126 : vector<4x1xf32> to vector<4x256xf32>
    %128 = arith.mulf %125, %127 : vector<4x256xf32>
    %129 = vector.extract_strided_slice %7 {offsets = [0, 19], sizes = [4, 256], strides = [1, 1]} : vector<4x358xf32> to vector<4x256xf32>
    %130 = vector.extract_strided_slice %8 {offsets = [0, 10], sizes = [4, 1], strides = [1, 1]} : vector<4x49xf32> to vector<4x1xf32>
    %131 = vector.broadcast %130 : vector<4x1xf32> to vector<4x256xf32>
    %132 = arith.mulf %129, %131 : vector<4x256xf32>
    %133 = arith.addf %128, %132 : vector<4x256xf32>
    %134 = vector.extract_strided_slice %7 {offsets = [0, 35], sizes = [4, 256], strides = [1, 1]} : vector<4x358xf32> to vector<4x256xf32>
    %135 = vector.extract_strided_slice %8 {offsets = [0, 17], sizes = [4, 1], strides = [1, 1]} : vector<4x49xf32> to vector<4x1xf32>
    %136 = vector.broadcast %135 : vector<4x1xf32> to vector<4x256xf32>
    %137 = arith.mulf %134, %136 : vector<4x256xf32>
    %138 = arith.addf %133, %137 : vector<4x256xf32>
    %139 = vector.extract_strided_slice %7 {offsets = [0, 51], sizes = [4, 256], strides = [1, 1]} : vector<4x358xf32> to vector<4x256xf32>
    %140 = vector.extract_strided_slice %8 {offsets = [0, 24], sizes = [4, 1], strides = [1, 1]} : vector<4x49xf32> to vector<4x1xf32>
    %141 = vector.broadcast %140 : vector<4x1xf32> to vector<4x256xf32>
    %142 = arith.mulf %139, %141 : vector<4x256xf32>
    %143 = arith.addf %138, %142 : vector<4x256xf32>
    %144 = vector.extract_strided_slice %7 {offsets = [0, 67], sizes = [4, 256], strides = [1, 1]} : vector<4x358xf32> to vector<4x256xf32>
    %145 = vector.extract_strided_slice %8 {offsets = [0, 31], sizes = [4, 1], strides = [1, 1]} : vector<4x49xf32> to vector<4x1xf32>
    %146 = vector.broadcast %145 : vector<4x1xf32> to vector<4x256xf32>
    %147 = arith.mulf %144, %146 : vector<4x256xf32>
    %148 = arith.addf %143, %147 : vector<4x256xf32>
    %149 = vector.extract_strided_slice %7 {offsets = [0, 83], sizes = [4, 256], strides = [1, 1]} : vector<4x358xf32> to vector<4x256xf32>
    %150 = vector.extract_strided_slice %8 {offsets = [0, 38], sizes = [4, 1], strides = [1, 1]} : vector<4x49xf32> to vector<4x1xf32>
    %151 = vector.broadcast %150 : vector<4x1xf32> to vector<4x256xf32>
    %152 = arith.mulf %149, %151 : vector<4x256xf32>
    %153 = arith.addf %148, %152 : vector<4x256xf32>
    %154 = vector.extract_strided_slice %7 {offsets = [0, 99], sizes = [4, 256], strides = [1, 1]} : vector<4x358xf32> to vector<4x256xf32>
    %155 = vector.extract_strided_slice %8 {offsets = [0, 45], sizes = [4, 1], strides = [1, 1]} : vector<4x49xf32> to vector<4x1xf32>
    %156 = vector.broadcast %155 : vector<4x1xf32> to vector<4x256xf32>
    %157 = arith.mulf %154, %156 : vector<4x256xf32>
    %158 = arith.addf %153, %157 : vector<4x256xf32>
    %159 = vector.extract_strided_slice %9 {offsets = [3, 0], sizes = [1, 256], strides = [1, 1]} : vector<7x256xf32> to vector<1x256xf32>
    %160 = vector.broadcast %159 : vector<1x256xf32> to vector<4x256xf32>
    %161 = arith.mulf %158, %160 : vector<4x256xf32>
    %162 = arith.addf %124, %161 : vector<4x256xf32>
    %163 = vector.extract_strided_slice %7 {offsets = [0, 4], sizes = [4, 256], strides = [1, 1]} : vector<4x358xf32> to vector<4x256xf32>
    %164 = vector.extract_strided_slice %8 {offsets = [0, 4], sizes = [4, 1], strides = [1, 1]} : vector<4x49xf32> to vector<4x1xf32>
    %165 = vector.broadcast %164 : vector<4x1xf32> to vector<4x256xf32>
    %166 = arith.mulf %163, %165 : vector<4x256xf32>
    %167 = vector.extract_strided_slice %7 {offsets = [0, 20], sizes = [4, 256], strides = [1, 1]} : vector<4x358xf32> to vector<4x256xf32>
    %168 = vector.extract_strided_slice %8 {offsets = [0, 11], sizes = [4, 1], strides = [1, 1]} : vector<4x49xf32> to vector<4x1xf32>
    %169 = vector.broadcast %168 : vector<4x1xf32> to vector<4x256xf32>
    %170 = arith.mulf %167, %169 : vector<4x256xf32>
    %171 = arith.addf %166, %170 : vector<4x256xf32>
    %172 = vector.extract_strided_slice %7 {offsets = [0, 36], sizes = [4, 256], strides = [1, 1]} : vector<4x358xf32> to vector<4x256xf32>
    %173 = vector.extract_strided_slice %8 {offsets = [0, 18], sizes = [4, 1], strides = [1, 1]} : vector<4x49xf32> to vector<4x1xf32>
    %174 = vector.broadcast %173 : vector<4x1xf32> to vector<4x256xf32>
    %175 = arith.mulf %172, %174 : vector<4x256xf32>
    %176 = arith.addf %171, %175 : vector<4x256xf32>
    %177 = vector.extract_strided_slice %7 {offsets = [0, 52], sizes = [4, 256], strides = [1, 1]} : vector<4x358xf32> to vector<4x256xf32>
    %178 = vector.extract_strided_slice %8 {offsets = [0, 25], sizes = [4, 1], strides = [1, 1]} : vector<4x49xf32> to vector<4x1xf32>
    %179 = vector.broadcast %178 : vector<4x1xf32> to vector<4x256xf32>
    %180 = arith.mulf %177, %179 : vector<4x256xf32>
    %181 = arith.addf %176, %180 : vector<4x256xf32>
    %182 = vector.extract_strided_slice %7 {offsets = [0, 68], sizes = [4, 256], strides = [1, 1]} : vector<4x358xf32> to vector<4x256xf32>
    %183 = vector.extract_strided_slice %8 {offsets = [0, 32], sizes = [4, 1], strides = [1, 1]} : vector<4x49xf32> to vector<4x1xf32>
    %184 = vector.broadcast %183 : vector<4x1xf32> to vector<4x256xf32>
    %185 = arith.mulf %182, %184 : vector<4x256xf32>
    %186 = arith.addf %181, %185 : vector<4x256xf32>
    %187 = vector.extract_strided_slice %7 {offsets = [0, 84], sizes = [4, 256], strides = [1, 1]} : vector<4x358xf32> to vector<4x256xf32>
    %188 = vector.extract_strided_slice %8 {offsets = [0, 39], sizes = [4, 1], strides = [1, 1]} : vector<4x49xf32> to vector<4x1xf32>
    %189 = vector.broadcast %188 : vector<4x1xf32> to vector<4x256xf32>
    %190 = arith.mulf %187, %189 : vector<4x256xf32>
    %191 = arith.addf %186, %190 : vector<4x256xf32>
    %192 = vector.extract_strided_slice %7 {offsets = [0, 100], sizes = [4, 256], strides = [1, 1]} : vector<4x358xf32> to vector<4x256xf32>
    %193 = vector.extract_strided_slice %8 {offsets = [0, 46], sizes = [4, 1], strides = [1, 1]} : vector<4x49xf32> to vector<4x1xf32>
    %194 = vector.broadcast %193 : vector<4x1xf32> to vector<4x256xf32>
    %195 = arith.mulf %192, %194 : vector<4x256xf32>
    %196 = arith.addf %191, %195 : vector<4x256xf32>
    %197 = vector.extract_strided_slice %9 {offsets = [4, 0], sizes = [1, 256], strides = [1, 1]} : vector<7x256xf32> to vector<1x256xf32>
    %198 = vector.broadcast %197 : vector<1x256xf32> to vector<4x256xf32>
    %199 = arith.mulf %196, %198 : vector<4x256xf32>
    %200 = arith.addf %162, %199 : vector<4x256xf32>
    %201 = vector.extract_strided_slice %7 {offsets = [0, 5], sizes = [4, 256], strides = [1, 1]} : vector<4x358xf32> to vector<4x256xf32>
    %202 = vector.extract_strided_slice %8 {offsets = [0, 5], sizes = [4, 1], strides = [1, 1]} : vector<4x49xf32> to vector<4x1xf32>
    %203 = vector.broadcast %202 : vector<4x1xf32> to vector<4x256xf32>
    %204 = arith.mulf %201, %203 : vector<4x256xf32>
    %205 = vector.extract_strided_slice %7 {offsets = [0, 21], sizes = [4, 256], strides = [1, 1]} : vector<4x358xf32> to vector<4x256xf32>
    %206 = vector.extract_strided_slice %8 {offsets = [0, 12], sizes = [4, 1], strides = [1, 1]} : vector<4x49xf32> to vector<4x1xf32>
    %207 = vector.broadcast %206 : vector<4x1xf32> to vector<4x256xf32>
    %208 = arith.mulf %205, %207 : vector<4x256xf32>
    %209 = arith.addf %204, %208 : vector<4x256xf32>
    %210 = vector.extract_strided_slice %7 {offsets = [0, 37], sizes = [4, 256], strides = [1, 1]} : vector<4x358xf32> to vector<4x256xf32>
    %211 = vector.extract_strided_slice %8 {offsets = [0, 19], sizes = [4, 1], strides = [1, 1]} : vector<4x49xf32> to vector<4x1xf32>
    %212 = vector.broadcast %211 : vector<4x1xf32> to vector<4x256xf32>
    %213 = arith.mulf %210, %212 : vector<4x256xf32>
    %214 = arith.addf %209, %213 : vector<4x256xf32>
    %215 = vector.extract_strided_slice %7 {offsets = [0, 53], sizes = [4, 256], strides = [1, 1]} : vector<4x358xf32> to vector<4x256xf32>
    %216 = vector.extract_strided_slice %8 {offsets = [0, 26], sizes = [4, 1], strides = [1, 1]} : vector<4x49xf32> to vector<4x1xf32>
    %217 = vector.broadcast %216 : vector<4x1xf32> to vector<4x256xf32>
    %218 = arith.mulf %215, %217 : vector<4x256xf32>
    %219 = arith.addf %214, %218 : vector<4x256xf32>
    %220 = vector.extract_strided_slice %7 {offsets = [0, 69], sizes = [4, 256], strides = [1, 1]} : vector<4x358xf32> to vector<4x256xf32>
    %221 = vector.extract_strided_slice %8 {offsets = [0, 33], sizes = [4, 1], strides = [1, 1]} : vector<4x49xf32> to vector<4x1xf32>
    %222 = vector.broadcast %221 : vector<4x1xf32> to vector<4x256xf32>
    %223 = arith.mulf %220, %222 : vector<4x256xf32>
    %224 = arith.addf %219, %223 : vector<4x256xf32>
    %225 = vector.extract_strided_slice %7 {offsets = [0, 85], sizes = [4, 256], strides = [1, 1]} : vector<4x358xf32> to vector<4x256xf32>
    %226 = vector.extract_strided_slice %8 {offsets = [0, 40], sizes = [4, 1], strides = [1, 1]} : vector<4x49xf32> to vector<4x1xf32>
    %227 = vector.broadcast %226 : vector<4x1xf32> to vector<4x256xf32>
    %228 = arith.mulf %225, %227 : vector<4x256xf32>
    %229 = arith.addf %224, %228 : vector<4x256xf32>
    %230 = vector.extract_strided_slice %7 {offsets = [0, 101], sizes = [4, 256], strides = [1, 1]} : vector<4x358xf32> to vector<4x256xf32>
    %231 = vector.extract_strided_slice %8 {offsets = [0, 47], sizes = [4, 1], strides = [1, 1]} : vector<4x49xf32> to vector<4x1xf32>
    %232 = vector.broadcast %231 : vector<4x1xf32> to vector<4x256xf32>
    %233 = arith.mulf %230, %232 : vector<4x256xf32>
    %234 = arith.addf %229, %233 : vector<4x256xf32>
    %235 = vector.extract_strided_slice %9 {offsets = [5, 0], sizes = [1, 256], strides = [1, 1]} : vector<7x256xf32> to vector<1x256xf32>
    %236 = vector.broadcast %235 : vector<1x256xf32> to vector<4x256xf32>
    %237 = arith.mulf %234, %236 : vector<4x256xf32>
    %238 = arith.addf %200, %237 : vector<4x256xf32>
    %239 = vector.extract_strided_slice %7 {offsets = [0, 6], sizes = [4, 256], strides = [1, 1]} : vector<4x358xf32> to vector<4x256xf32>
    %240 = vector.extract_strided_slice %8 {offsets = [0, 6], sizes = [4, 1], strides = [1, 1]} : vector<4x49xf32> to vector<4x1xf32>
    %241 = vector.broadcast %240 : vector<4x1xf32> to vector<4x256xf32>
    %242 = arith.mulf %239, %241 : vector<4x256xf32>
    %243 = vector.extract_strided_slice %7 {offsets = [0, 22], sizes = [4, 256], strides = [1, 1]} : vector<4x358xf32> to vector<4x256xf32>
    %244 = vector.extract_strided_slice %8 {offsets = [0, 13], sizes = [4, 1], strides = [1, 1]} : vector<4x49xf32> to vector<4x1xf32>
    %245 = vector.broadcast %244 : vector<4x1xf32> to vector<4x256xf32>
    %246 = arith.mulf %243, %245 : vector<4x256xf32>
    %247 = arith.addf %242, %246 : vector<4x256xf32>
    %248 = vector.extract_strided_slice %7 {offsets = [0, 38], sizes = [4, 256], strides = [1, 1]} : vector<4x358xf32> to vector<4x256xf32>
    %249 = vector.extract_strided_slice %8 {offsets = [0, 20], sizes = [4, 1], strides = [1, 1]} : vector<4x49xf32> to vector<4x1xf32>
    %250 = vector.broadcast %249 : vector<4x1xf32> to vector<4x256xf32>
    %251 = arith.mulf %248, %250 : vector<4x256xf32>
    %252 = arith.addf %247, %251 : vector<4x256xf32>
    %253 = vector.extract_strided_slice %7 {offsets = [0, 54], sizes = [4, 256], strides = [1, 1]} : vector<4x358xf32> to vector<4x256xf32>
    %254 = vector.extract_strided_slice %8 {offsets = [0, 27], sizes = [4, 1], strides = [1, 1]} : vector<4x49xf32> to vector<4x1xf32>
    %255 = vector.broadcast %254 : vector<4x1xf32> to vector<4x256xf32>
    %256 = arith.mulf %253, %255 : vector<4x256xf32>
    %257 = arith.addf %252, %256 : vector<4x256xf32>
    %258 = vector.extract_strided_slice %7 {offsets = [0, 70], sizes = [4, 256], strides = [1, 1]} : vector<4x358xf32> to vector<4x256xf32>
    %259 = vector.extract_strided_slice %8 {offsets = [0, 34], sizes = [4, 1], strides = [1, 1]} : vector<4x49xf32> to vector<4x1xf32>
    %260 = vector.broadcast %259 : vector<4x1xf32> to vector<4x256xf32>
    %261 = arith.mulf %258, %260 : vector<4x256xf32>
    %262 = arith.addf %257, %261 : vector<4x256xf32>
    %263 = vector.extract_strided_slice %7 {offsets = [0, 86], sizes = [4, 256], strides = [1, 1]} : vector<4x358xf32> to vector<4x256xf32>
    %264 = vector.extract_strided_slice %8 {offsets = [0, 41], sizes = [4, 1], strides = [1, 1]} : vector<4x49xf32> to vector<4x1xf32>
    %265 = vector.broadcast %264 : vector<4x1xf32> to vector<4x256xf32>
    %266 = arith.mulf %263, %265 : vector<4x256xf32>
    %267 = arith.addf %262, %266 : vector<4x256xf32>
    %268 = vector.extract_strided_slice %7 {offsets = [0, 102], sizes = [4, 256], strides = [1, 1]} : vector<4x358xf32> to vector<4x256xf32>
    %269 = vector.extract_strided_slice %8 {offsets = [0, 48], sizes = [4, 1], strides = [1, 1]} : vector<4x49xf32> to vector<4x1xf32>
    %270 = vector.broadcast %269 : vector<4x1xf32> to vector<4x256xf32>
    %271 = arith.mulf %268, %270 : vector<4x256xf32>
    %272 = arith.addf %267, %271 : vector<4x256xf32>
    %273 = vector.extract_strided_slice %9 {offsets = [6, 0], sizes = [1, 256], strides = [1, 1]} : vector<7x256xf32> to vector<1x256xf32>
    %274 = vector.broadcast %273 : vector<1x256xf32> to vector<4x256xf32>
    %275 = arith.mulf %272, %274 : vector<4x256xf32>
    %276 = arith.addf %238, %275 : vector<4x256xf32>
    %277 = vector.extract_strided_slice %276 {offsets = [0, 0], sizes = [2, 256], strides = [1, 1]} : vector<4x256xf32> to vector<2x256xf32>
    %278 = vector.extract_strided_slice %276 {offsets = [2, 0], sizes = [2, 256], strides = [1, 1]} : vector<4x256xf32> to vector<2x256xf32>
    %279 = arith.addf %277, %278 : vector<2x256xf32>
    %c0_10 = arith.constant 0 : index
    %280 = memref.load %arg4[%c0_10] : memref<1xf32, #tpu.memory_space<smem>>
    %281 = vector.broadcast %280 : f32 to vector<2x256xf32>
    %282 = arith.addf %279, %281 : vector<2x256xf32>
    %cst_11 = arith.constant 0.000000e+00 : f32
    %283 = vector.broadcast %cst_11 : f32 to vector<2x256xf32>
    %284 = arith.subf %283, %282 : vector<2x256xf32>
    %285 = math.exp %284 : vector<2x256xf32>
    %cst_12 = arith.constant 1.000000e+00 : f32
    %286 = vector.broadcast %cst_12 : f32 to vector<2x256xf32>
    %287 = arith.addf %286, %285 : vector<2x256xf32>
    %cst_13 = arith.constant 1.000000e+00 : f32
    %288 = vector.broadcast %cst_13 : f32 to vector<2x256xf32>
    %289 = arith.divf %288, %287 : vector<2x256xf32>
    %290 = vector.shape_cast %289 : vector<2x256xf32> to vector<2x1x256xf32>
    %291 = vector.broadcast %290 : vector<2x1x256xf32> to vector<2x4x256xf32>
    %292 = arith.mulf %0, %291 : vector<2x4x256xf32>
    %c0_14 = arith.constant 0 : index
    %c0_15 = arith.constant 0 : index
    %c0_16 = arith.constant 0 : index
    %293 = vector.load %arg5[%c0_14, %c0_15, %c0_16] : memref<2x4x256xf32, #tpu.memory_space<vmem>>, vector<2x4x256xf32>
    tpu.vector_store %arg5[%c0_14, %c0_15, %c0_16], %292 {strides = array<i32>} : memref<2x4x256xf32, #tpu.memory_space<vmem>>, vector<2x4x256xf32>,
    return
  }
  func.func @transform_0(%arg0: i32) -> (i32, i32, i32) {
    %c0_i32 = arith.constant 0 : i32
    %c0_i32_0 = arith.constant 0 : i32
    %c0_i32_1 = arith.constant 0 : i32
    return %arg0, %c0_i32, %c0_i32_0 : i32, i32, i32
  }
  func.func @transform_1(%arg0: i32) -> (i32, i32) {
    %c0_i32 = arith.constant 0 : i32
    %c0_i32_0 = arith.constant 0 : i32
    %c0_i32_1 = arith.constant 0 : i32
    return %c0_i32, %c0_i32_0 : i32, i32
  }
  func.func @transform_2(%arg0: i32) -> (i32, i32) {
    %c0_i32 = arith.constant 0 : i32
    %c0_i32_0 = arith.constant 0 : i32
    %c0_i32_1 = arith.constant 0 : i32
    return %c0_i32, %c0_i32_0 : i32, i32
  }
  func.func @transform_3(%arg0: i32) -> i32 {
    %c0_i32 = arith.constant 0 : i32
    %c0_i32_0 = arith.constant 0 : i32
    return %c0_i32 : i32
  }
  func.func @transform_4(%arg0: i32) -> (i32, i32, i32) {
    %c0_i32 = arith.constant 0 : i32
    %c0_i32_0 = arith.constant 0 : i32
    %c0_i32_1 = arith.constant 0 : i32
    return %arg0, %c0_i32, %c0_i32_0 : i32, i32, i32
  }
}

</mosaic_0001>

<bundles_post_ra>
// kernel: spatial_attention.1
= control target key start
LH: loop header
LB: loop body
LE: loop exit
PB: predicated region body
PF: predicated region fallthrough
CT: control target
= control target key end

     0   :  { %v1626_v0 = vmov 8   ;;  %v1627_v1 = vmov 0   ;;  %v269_v3 = vlaneseq  ;;  %vm26_vm0 = vcmask 1043456   ;;  %s1629_s23 = smov 1   ;;  %s1632_s24 = smov 51   ;;  %s2653_s1 = inlined_call_operand.vmem [shape: f32[4,49], index: 1, kind: input, shape index: {}]   ;;  %s2654_s0 = inlined_call_operand.vmem [shape: f32[2,4,256], index: 0, kind: input, shape index: {}]   ;;  %s2655_s2 = inlined_call_operand.vmem [shape: f32[7,256], index: 2, kind: input, shape index: {}]   ;;  %s2656_s3 = inlined_call_operand.<no memory space> [shape: f32[1], index: 3, kind: input, shape index: {}]   ;;  %s2657_s4 = inlined_call_operand.vmem [shape: f32[2,4,256], index: 4, kind: output, shape index: {}]  }
   0x1   :  { %1569 = vset.pattern.permute.xlu0 %v1626_v0  ;;  %1561 = vset.pattern.permute.xlu1 %v1627_v1  ;;  %v1723_v2 = vld [vmem:[%s2653_s1] sm:$0xf]  ;;  %v19_v5 = vld [vmem:[%s2654_s0 + $0x8] sm:$0xff]  ;;  %v1628_v18 = vmov 7   ;;  %vm100_vm1 = vcmask 1043459   ;;  %vm91_vm2 = vcmask 1041409  }
   0x2   :  { %289 = vperm.xlu0 %1569, %v1723_v2   ;;  %126 = vperm.xlu1 %1561, %v1723_v2   ;;  %v18_v4 = vld [vmem:[%s2654_s0] sm:$0xff]  ;;  %v1733_v6 = vshrl.u32 %v269_v3, 7  ;;  %v41_v8 = vsel %vm26_vm0, %v19_v5, 0.0  ;;  %v1741_v10 = vld [vmem:[%s2655_s2 + $0x8] sm:$0x7f]  ;;  %v73_v14 = vsel %vm26_vm0, %v19_v5, -inf  ;;  %v23_v22 = vcombine.high %v19_v5, %v19_v5 }
   0x3   :  { %v27_v7 = vsel %vm26_vm0, %v18_v4, 0.0  ;;  %v59_v9 = vsel %vm26_vm0, %v18_v4, -inf  ;;  %v42_v12 = vrot.slane %v41_v8, 4  ;;  %v74_v16 = vrot.slane %v73_v14, 4  ;;  %s1647_s27 = smov 112   ;;  %s1648_s28 = smov 96  }
   0x4   :  { %2672 = vst [vmem:[#allocation3_spill] sm:$0xff] %v1733_v6  ;;  %v28_v11 = vrot.slane %v27_v7, 4  ;;  %v60_v13 = vrot.slane %v59_v9, 4  ;;  %v1745_v15 = vsub.s32 1, %v1733_v6  ;;  %v22_v17 = vcombine.high %v18_v4, %v18_v4  ;;  %s1649_s29 = smov 80   ;;  %s1650_s30 = smov 64  }
   0x5   :  { %v43_v20 = vadd.f32 %v42_v12, %v41_v8  ;;  %v75_v24 = vmax.f32 %v73_v14, %v74_v16  ;;  %v48_v32 = vsel %vm26_vm0, %v23_v22, 0.0  ;;  %v80_v34 = vsel %vm26_vm0, %v23_v22, -inf  ;;  %s1651_s5 = smov 48   ;;  %s1652_s6 = smov 32  }
   0x6   :  { %2673 = vst [vmem:[#allocation4_spill] sm:$0xff] %v1745_v15  ;;  %1562 = vset.pattern.permute.xlu1 %v1628_v18  ;;  %v29_v19 = vadd.f32 %v28_v11, %v27_v7  ;;  %v61_v21 = vmax.f32 %v59_v9, %v60_v13  ;;  %v439_v23 = vrot.slane %v1741_v10, %v1745_v15  ;;  %v34_v25 = vsel %vm26_vm0, %v22_v17, 0.0  ;;  %s1657_s7 = smov 2   ;;  %s1674_s8 = smov 127  }
   0x7   :  { %132 = vperm.xlu1 %1562, %v1723_v2   ;;  %v66_v26 = vsel %vm26_vm0, %v22_v17, -inf  ;;  %v44_v28 = vrot.slane %v43_v20, 2  ;;  %v35_v30 = vrot.slane %v34_v25, 4  ;;  %v76_v31 = vrot.slane %v75_v24, 2  ;;  %s1677_s9 = smov 126   ;;  %s1687_s15 = smov 4  }
   0x8   :  { %v30_v27 = vrot.slane %v29_v19, 2  ;;  %v62_v29 = vrot.slane %v61_v21, 2  ;;  %444 = vrot.lane.b32.xlu0 %v439_v23, %s1629_s23  ;;  %v67_v33 = vrot.slane %v66_v26, 4  ;;  %v1630_v39 = vmov 14   ;;  %s1688_s16 = smov 5   ;;  %s1689_s17 = smov 6  }
   0x9   :  { %v45_v36 = vadd.f32 %v44_v28, %v43_v20  ;;  %v36_v38 = vadd.f32 %v35_v30, %v34_v25  ;;  %v77_v40 = vmax.f32 %v75_v24, %v76_v31  ;;  %v49_v41 = vrot.slane %v48_v32, 4  ;;  %v1776_v31 = vld [vmem:[%s2655_s2] sm:$0x7f]  ;;  %s1690_s18 = smov 125   ;;  %s1691_s19 = smov 124  }
   0xa   :  { %v31_v35 = vadd.f32 %v30_v27, %v29_v19  ;;  %v63_v37 = vmax.f32 %v61_v21, %v62_v29  ;;  %v68_v42 = vmax.f32 %v66_v26, %v67_v33  ;;  %v81_v43 = vrot.slane %v80_v34, 4  ;;  %s1692_s20 = smov 123   ;;  %s1693_s21 = smov 122  }
   0xb   :  { %1563 = vset.pattern.permute.xlu1 %v1630_v39  ;;  %v46_v45 = vrot.slane %v45_v36, 1  ;;  %v37_v47 = vrot.slane %v36_v38, 2  ;;  %v78_v48 = vrot.slane %v77_v40, 1  ;;  %v50_v49 = vadd.f32 %v49_v41, %v48_v32 }
   0xc   :  { %155 = vperm.xlu1 %1563, %v1723_v2   ;;  %v32_v44 = vrot.slane %v31_v35, 1  ;;  %v64_v46 = vrot.slane %v63_v37, 1  ;;  %v69_v50 = vrot.slane %v68_v42, 2  ;;  %v82_v51 = vmax.f32 %v80_v34, %v81_v43 }
   0xd   :  { %v47_v53 = vadd.f32 %v46_v45, %v45_v36  ;;  %v38_v55 = vadd.f32 %v37_v47, %v36_v38  ;;  %v79_v56 = vmax.f32 %v77_v40, %v78_v48  ;;  %v51_v57 = vrot.slane %v50_v49, 2 }
   0xe   :  { %v33_v52 = vadd.f32 %v32_v44, %v31_v35  ;;  %v65_v54 = vmax.f32 %v63_v37, %v64_v46  ;;  %v70_v58 = vmax.f32 %v68_v42, %v69_v50  ;;  %v83_v59 = vrot.slane %v82_v51, 2 }
   0xf   :  { %v1631_v60 = vmov 21   ;;  %v57_v62 = vmul.f32 0.25, %v47_v53  ;;  %vm105_vm3 = vcmask 1041408   ;;  %v39_v63 = vrot.slane %v38_v55, 1 }
  0x10   :  { %1564 = vset.pattern.permute.xlu1 %v1631_v60  ;;  %v55_v61 = vmul.f32 0.25, %v33_v52  ;;  %v101_v0 = vsel %vm100_vm1, %v79_v56, %v65_v54  ;;  %v52_v1 = vadd.f32 %v51_v57, %v50_v49  ;;  %v71_v3 = vrot.slane %v70_v58, 1 }
  0x11   :  { %178 = vperm.xlu1 %1564, %v1723_v2   ;;  %v84_v4 = vmax.f32 %v82_v51, %v83_v59  ;;  %v40_v7 = vadd.f32 %v39_v63, %v38_v55  ;;  %v1633_v13 = vmov 28   ;;  %v1634_v18 = vmov 2  }
  0x12   :  { %v92_v5 = vsel %vm91_vm2, %v57_v62, %v55_v61  ;;  %v53_v9 = vrot.slane %v52_v1, 1  ;;  %v72_v11 = vmax.f32 %v70_v58, %v71_v3  ;;  %1575 = vset.pattern.permute.xlu0 %v1634_v18  ;;  %v1635_v22 = vmov 35  }
  0x13   :  { %v106_v8 = vsel %vm105_vm3, %v92_v5, %v101_v0  ;;  %v85_v12 = vrot.slane %v84_v4, 1  ;;  %v56_v16 = vmul.f32 0.25, %v40_v7  ;;  %v1636_v24 = vmov 42  }
  0x14   :  { %110 = vrot.lane.b32.xlu0 %v106_v8, %s1632_s24  ;;  %v54_v14 = vadd.f32 %v53_v9, %v52_v1  ;;  %v1637_v25 = vmov 16   ;;  %v1638_v26 = vmov 1   ;;  %v1639_v27 = vmov 15  }
  0x15   :  { %1565 = vset.pattern.permute.xlu1 %v1633_v13  ;;  %v86_v17 = vmax.f32 %v84_v4, %v85_v12  ;;  %v1640_v28 = vmov 22   ;;  %v1641_v29 = vmov 29   ;;  %v1642_v30 = vmov 36  }
  0x16   :  { %201 = vperm.xlu1 %1565, %v1723_v2   ;;  %v58_v19 = vmul.f32 0.25, %v54_v14  ;;  %v1643_v32 = vmov 43   ;;  %v435_v33 = vrot.slane %v1776_v31, %v1745_v15  ;;  %v1644_v34 = vmov 9  }
  0x17   :  { %v102_v20 = vsel %vm100_vm1, %v86_v17, %v72_v11  ;;  %v1645_v35 = vmov 23   ;;  %vm114_vm4 = vcmask 416768   ;;  %v1646_v42 = vmov 30  }
  0x18   :  { %v93_v21 = vsel %vm91_vm2, %v58_v19, %v56_v16  ;;  %vm147_vm5 = vcmask 916480   ;;  %vm170_vm6 = vcmask 785408   ;;  %vm193_vm7 = vcmask 654336  }
  0x19   :  { %v107_v23 = vsel %vm105_vm3, %v93_v21, %v102_v20  ;;  %vm216_vm8 = vcmask 523264   ;;  %vm239_vm9 = vcmask 392192   ;;  %vm262_vm10 = vcmask 261120  }
  0x1a   :  { %1566 = vset.pattern.permute.xlu1 %v1635_v22  ;;  %112 = vrot.lane.b32.xlu0 %v107_v23, %s1632_s24  ;;  %vm446_vm11 = vcmask 7168   ;;  %vm635_vm12 = vcmask 15360   ;;  %vm463_vm13 = vcmask 1039360   ;;  %vm652_vm14 = vcmask 1031168  }
  0x1b   :  { %224 = vperm.xlu1 %1566, %v1723_v2   ;;  %vm824_vm15 = vcmask 23552   ;;  %vm1013_vm0 = vcmask 31744   ;;  %vm1202_vm1 = vcmask 39936   ;;  %vm1391_vm2 = vcmask 48128  }
  0x1c   :  { %vm841_vm3 = vcmask 1022976  }
  0x1e   :  { %471 = vperm.xlu0 %1575, %v1723_v2  }
  0x1f   :  { %1567 = vset.pattern.permute.xlu1 %v1636_v24 }
  0x20   :  { %247 = vperm.xlu1 %1567, %v1723_v2  }
  0x22   :  { %1577 = vset.pattern.permute.xlu0 %v1637_v25 }
  0x23   :  { %502 = vperm.xlu0 %1577, %v1723_v2  }
  0x24   :  { %1568 = vset.pattern.permute.xlu1 %v1638_v26 }
  0x25   :  { %282 = vperm.xlu1 %1568, %v1723_v2  }
  0x29   :  { %1570 = vset.pattern.permute.xlu1 %v1639_v27 }
  0x2a   :  { %313 = vperm.xlu1 %1570, %v1723_v2  }
  0x2e   :  { %1571 = vset.pattern.permute.xlu1 %v1640_v28 }
  0x2f   :  { %337 = vperm.xlu1 %1571, %v1723_v2  }
  0x33   :  { %1572 = vset.pattern.permute.xlu1 %v1641_v29 }
  0x34   :  { %361 = vperm.xlu1 %1572, %v1723_v2  }
  0x38   :  { %1573 = vset.pattern.permute.xlu1 %v1642_v30 }
  0x39   :  { %385 = vperm.xlu1 %1573, %v1723_v2  }
  0x3d   :  { %1574 = vset.pattern.permute.xlu1 %v1643_v32 }
  0x3e   :  { %409 = vperm.xlu1 %1574, %v1723_v2  }
  0x42   :  { %442 = vrot.lane.b32.xlu1 %v435_v33, %s1629_s23 }
  0x43   :  { %1576 = vset.pattern.permute.xlu1 %v1644_v34 }
  0x46   :  { %478 = vperm.xlu1 %1576, %v1723_v2  }
  0x4a   :  { %1578 = vset.pattern.permute.xlu1 %v1645_v35 }
  0x4b   :  { %526 = vperm.xlu1 %1578, %v1723_v2  }
  0x4f   :  { %1579 = vset.pattern.permute.xlu1 %v1646_v42 }
  0x81   :  { %v1784_v36 = vpop.permute.xlu0 %289  ;;  %v1786_v37 = vpop.permute.xlu1 %126 }
  0x85   :  { %v1788_v38 = vpop.permute.xlu0 %444 }
  0x86   :  { %v133_v39 = vpop.permute.xlu1 %132 }
  0x89   :  { %v111_v40 = vpop.permute.xlu0 %110 }
  0x8a   :  { %v1791_v41 = vsel %vm114_vm4, 0.0, %v111_v40 }
  0x8b   :  { %v156_v43 = vpop.permute.xlu1 %155  ;;  %v135_v44 = vmul.f32 %v133_v39, %v1791_v41  ;;  %v292_v45 = vmul.f32 %v1784_v36, %v1791_v41 }
  0x8c   :  { %v158_v46 = vmul.f32 %v156_v43, %v1791_v41 }
  0x8d   :  { %141 = vrot.lane.b32.xlu0 %v135_v44, %s1647_s27  ;;  %298 = vrot.lane.b32.xlu1 %v292_v45, %s1647_s27  ;;  %v113_v0 = vpop.permute.xlu0 %112 }
  0x8e   :  { %v1830_v13 = vsel %vm114_vm4, %v111_v40, %v113_v0  ;;  %v1835_v16 = vsel %vm114_vm4, %v113_v0, 0.0  ;;  %vm1030_vm4 = vcmask 1014784  }
  0x8f   :  { %v136_v17 = vmul.f32 %v133_v39, %v1830_v13  ;;  %v137_v18 = vmul.f32 %v133_v39, %v1835_v16  ;;  %v159_v19 = vmul.f32 %v156_v43, %v1830_v13  ;;  %v160_v20 = vmul.f32 %v156_v43, %v1835_v16 }
  0x90   :  { %v179_v47 = vpop.permute.xlu1 %178  ;;  %v293_v29 = vmul.f32 %v1784_v36, %v1830_v13  ;;  %v294_v30 = vmul.f32 %v1784_v36, %v1835_v16 }
  0x91   :  { %164 = vrot.lane.b32.xlu0 %v158_v46, %s1648_s28  ;;  %v181_v48 = vmul.f32 %v179_v47, %v1791_v41  ;;  %v182_v21 = vmul.f32 %v179_v47, %v1830_v13  ;;  %v183_v22 = vmul.f32 %v179_v47, %v1835_v16 }
  0x95   :  { %v202_v49 = vpop.permute.xlu1 %201  ;;  %187 = vrot.lane.b32.xlu0 %v181_v48, %s1649_s29 }
  0x96   :  { %v204_v50 = vmul.f32 %v202_v49, %v1791_v41  ;;  %v205_v23 = vmul.f32 %v202_v49, %v1830_v13  ;;  %v206_v24 = vmul.f32 %v202_v49, %v1835_v16 }
  0x99   :  { %210 = vrot.lane.b32.xlu0 %v204_v50, %s1650_s30 }
  0x9a   :  { %v225_v51 = vpop.permute.xlu1 %224 }
  0x9b   :  { %v227_v52 = vmul.f32 %v225_v51, %v1791_v41  ;;  %v228_v25 = vmul.f32 %v225_v51, %v1830_v13  ;;  %v229_v26 = vmul.f32 %v225_v51, %v1835_v16  ;;  %v1653_v51 = vmov 37  }
  0x9d   :  { %233 = vrot.lane.b32.xlu0 %v227_v52, %s1651_s5  ;;  %v1820_v4 = vpop.permute.xlu0 %471 }
  0x9f   :  { %v248_v53 = vpop.permute.xlu1 %247 }
  0xa0   :  { %v250_v54 = vmul.f32 %v248_v53, %v1791_v41  ;;  %v251_v27 = vmul.f32 %v248_v53, %v1830_v13  ;;  %v252_v28 = vmul.f32 %v248_v53, %v1835_v16 }
  0xa2   :  { %256 = vrot.lane.b32.xlu0 %v250_v54, %s1652_s6  ;;  %v503_v9 = vpop.permute.xlu0 %502 }
  0xa3   :  { %v505_v12 = vmul.f32 %v503_v9, %v1791_v41  ;;  %v506_v47 = vmul.f32 %v503_v9, %v1830_v13  ;;  %v507_v48 = vmul.f32 %v503_v9, %v1835_v16 }
  0xa4   :  { %v1808_v55 = vpop.permute.xlu1 %282 }
  0xa9   :  { %v314_v56 = vpop.permute.xlu1 %313 }
  0xaa   :  { %v316_v57 = vmul.f32 %v314_v56, %v1791_v41  ;;  %v317_v32 = vmul.f32 %v314_v56, %v1830_v13  ;;  %v318_v33 = vmul.f32 %v314_v56, %v1835_v16 }
  0xac   :  { %322 = vrot.lane.b32.xlu0 %v316_v57, %s1648_s28 }
  0xae   :  { %v338_v58 = vpop.permute.xlu1 %337 }
  0xaf   :  { %v340_v59 = vmul.f32 %v338_v58, %v1791_v41  ;;  %v341_v34 = vmul.f32 %v338_v58, %v1830_v13  ;;  %v342_v35 = vmul.f32 %v338_v58, %v1835_v16 }
  0xb1   :  { %346 = vrot.lane.b32.xlu0 %v340_v59, %s1649_s29 }
  0xb3   :  { %v362_v60 = vpop.permute.xlu1 %361 }
  0xb4   :  { %v364_v61 = vmul.f32 %v362_v60, %v1791_v41  ;;  %v365_v36 = vmul.f32 %v362_v60, %v1830_v13  ;;  %v366_v39 = vmul.f32 %v362_v60, %v1835_v16 }
  0xb6   :  { %370 = vrot.lane.b32.xlu0 %v364_v61, %s1650_s30 }
  0xb8   :  { %v386_v62 = vpop.permute.xlu1 %385 }
  0xb9   :  { %v388_v63 = vmul.f32 %v386_v62, %v1791_v41  ;;  %v389_v40 = vmul.f32 %v386_v62, %v1830_v13  ;;  %v390_v42 = vmul.f32 %v386_v62, %v1835_v16 }
  0xbb   :  { %394 = vrot.lane.b32.xlu0 %v388_v63, %s1651_s5 }
  0xbd   :  { %v410_v1 = vpop.permute.xlu1 %409 }
  0xbe   :  { %v412_v3 = vmul.f32 %v410_v1, %v1791_v41  ;;  %v413_v43 = vmul.f32 %v410_v1, %v1830_v13  ;;  %v414_v44 = vmul.f32 %v410_v1, %v1835_v16 }
  0xc0   :  { %418 = vrot.lane.b32.xlu0 %v412_v3, %s1652_s6 }
  0xc1   :  { %v1822_v5 = vpop.permute.xlu1 %442 }
  0xc5   :  { %v479_v7 = vpop.permute.xlu1 %478 }
  0xc6   :  { %v481_v8 = vmul.f32 %v479_v7, %v1791_v41  ;;  %v483_v45 = vmul.f32 %v479_v7, %v1835_v16  ;;  %v482_v46 = vmul.f32 %v479_v7, %v1830_v13 }
  0xc8   :  { %487 = vrot.lane.b32.xlu1 %v481_v8, %s1647_s27 }
  0xca   :  { %v1826_v11 = vpop.permute.xlu1 %526 }
  0xcb   :  { %v529_v14 = vmul.f32 %v1826_v11, %v1791_v41  ;;  %v530_v49 = vmul.f32 %v1826_v11, %v1830_v13  ;;  %v531_v50 = vmul.f32 %v1826_v11, %v1835_v16 }
  0xcc   :  { %511 = vrot.lane.b32.xlu1 %v505_v12, %s1648_s28 }
  0xcd   :  { %535 = vrot.lane.b32.xlu0 %v529_v14, %s1649_s29 }
  0xd0   :  { %143 = vrot.lane.b32.xlu1 %v136_v17, %s1647_s27 }
  0xd1   :  { %145 = vrot.lane.b32.xlu0 %v137_v18, %s1647_s27 }
  0xd4   :  { %166 = vrot.lane.b32.xlu1 %v159_v19, %s1648_s28  ;;  %v1654_v19 = vmov 44  }
  0xd5   :  { %168 = vrot.lane.b32.xlu0 %v160_v20, %s1648_s28 }
  0xd8   :  { %189 = vrot.lane.b32.xlu1 %v182_v21, %s1649_s29 }
  0xd9   :  { %191 = vrot.lane.b32.xlu0 %v183_v22, %s1649_s29 }
  0xdc   :  { %212 = vrot.lane.b32.xlu1 %v205_v23, %s1650_s30 }
  0xdd   :  { %214 = vrot.lane.b32.xlu0 %v206_v24, %s1650_s30 }
  0xe0   :  { %235 = vrot.lane.b32.xlu1 %v228_v25, %s1651_s5  ;;  %v1655_v25 = vmov 10  }
  0xe1   :  { %237 = vrot.lane.b32.xlu0 %v229_v26, %s1651_s5  ;;  %v1656_v26 = vmov 3  }
  0xe2   :  { %1582 = vset.pattern.permute.xlu0 %v1656_v26 }
  0xe4   :  { %258 = vrot.lane.b32.xlu1 %v251_v27, %s1652_s6 }
  0xe5   :  { %260 = vrot.lane.b32.xlu0 %v252_v28, %s1652_s6  ;;  %v623_v28 = vsub.s32 2, %v1733_v6 }
  0xe8   :  { %300 = vrot.lane.b32.xlu1 %v293_v29, %s1647_s27 }
  0xe9   :  { %302 = vrot.lane.b32.xlu0 %v294_v30, %s1647_s27 }
  0xec   :  { %324 = vrot.lane.b32.xlu1 %v317_v32, %s1648_s28 }
  0xed   :  { %326 = vrot.lane.b32.xlu0 %v318_v33, %s1648_s28  ;;  %v624_v33 = vrot.slane %v1776_v31, %v623_v28 }
  0xf0   :  { %348 = vrot.lane.b32.xlu1 %v341_v34, %s1649_s29 }
  0xf1   :  { %350 = vrot.lane.b32.xlu0 %v342_v35, %s1649_s29  ;;  %v628_v35 = vrot.slane %v1741_v10, %v623_v28 }
  0xf4   :  { %372 = vrot.lane.b32.xlu1 %v365_v36, %s1650_s30  ;;  %v1658_v36 = vmov 17  }
  0xf5   :  { %374 = vrot.lane.b32.xlu0 %v366_v39, %s1650_s30 }
  0xf8   :  { %396 = vrot.lane.b32.xlu1 %v389_v40, %s1651_s5 }
  0xf9   :  { %398 = vrot.lane.b32.xlu0 %v390_v42, %s1651_s5 }
  0xfc   :  { %420 = vrot.lane.b32.xlu1 %v413_v43, %s1652_s6 }
  0xfd   :  { %422 = vrot.lane.b32.xlu0 %v414_v44, %s1652_s6 }
  0xff   :  { %v1904_v52 = vpop.permute.xlu1 %298  ;;  %v1969_v39 = vpop.permute.xlu0 %141 }
 0x100   :  { %491 = vrot.lane.b32.xlu1 %v483_v45, %s1647_s27  ;;  %2679 = vst [vmem:[#allocation10_spill] sm:$0xff] %v1969_v39 }
 0x101   :  { %489 = vrot.lane.b32.xlu0 %v482_v46, %s1647_s27 }
 0x103   :  { %v1971_v40 = vpop.permute.xlu0 %164 }
 0x104   :  { %513 = vrot.lane.b32.xlu1 %v506_v47, %s1648_s28  ;;  %2680 = vst [vmem:[#allocation11_spill] sm:$0xff] %v1971_v40 }
 0x105   :  { %515 = vrot.lane.b32.xlu0 %v507_v48, %s1648_s28 }
 0x107   :  { %v1973_v31 = vpop.permute.xlu0 %187 }
 0x108   :  { %537 = vrot.lane.b32.xlu1 %v530_v49, %s1649_s29  ;;  %2681 = vst [vmem:[#allocation12_spill] sm:$0xff] %v1973_v31 }
 0x109   :  { %539 = vrot.lane.b32.xlu0 %v531_v50, %s1649_s29 }
 0x10b   :  { %v1975_v42 = vpop.permute.xlu0 %210 }
 0x10c   :  { %550 = vperm.xlu1 %1579, %v1723_v2   ;;  %2682 = vst [vmem:[#allocation13_spill] sm:$0xff] %v1975_v42 }
 0x10f   :  { %v1977_v43 = vpop.permute.xlu0 %233 }
 0x110   :  { %1580 = vset.pattern.permute.xlu1 %v1653_v51  ;;  %2683 = vst [vmem:[#allocation14_spill] sm:$0xff] %v1977_v43 }
 0x114   :  { %v1979_v44 = vpop.permute.xlu0 %256 }
 0x115   :  { %2684 = vst [vmem:[#allocation15_spill] sm:$0xff] %v1979_v44 }
 0x11e   :  { %v1981_v10 = vpop.permute.xlu0 %322 }
 0x123   :  { %v1983_v45 = vpop.permute.xlu0 %346 }
 0x128   :  { %v1985_v46 = vpop.permute.xlu0 %370 }
 0x12d   :  { %v1987_v47 = vpop.permute.xlu0 %394 }
 0x132   :  { %v1991_v49 = vpop.permute.xlu0 %418 }
 0x13a   :  { %v1906_v53 = vpop.permute.xlu1 %487 }
 0x13e   :  { %v1908_v54 = vpop.permute.xlu1 %511 }
 0x13f   :  { %v1993_v50 = vpop.permute.xlu0 %535 }
 0x142   :  { %v1910_v56 = vpop.permute.xlu1 %143 }
 0x146   :  { %v1912_v57 = vpop.permute.xlu1 %166 }
 0x147   :  { %2674 = vst [vmem:[#allocation5_spill] sm:$0xff] %v1912_v57 }
 0x14a   :  { %v1914_v58 = vpop.permute.xlu1 %189 }
 0x14b   :  { %2675 = vst [vmem:[#allocation6_spill] sm:$0xff] %v1914_v58 }
 0x14e   :  { %v1916_v59 = vpop.permute.xlu1 %212 }
 0x14f   :  { %2676 = vst [vmem:[#allocation7_spill] sm:$0xff] %v1916_v59 }
 0x152   :  { %v1918_v60 = vpop.permute.xlu1 %235 }
 0x153   :  { %2677 = vst [vmem:[#allocation8_spill] sm:$0xff] %v1918_v60  ;;  %v1660_v60 = vmov 31  }
 0x156   :  { %v1920_v61 = vpop.permute.xlu1 %258 }
 0x157   :  { %2678 = vst [vmem:[#allocation9_spill] sm:$0xff] %v1920_v61 }
 0x15a   :  { %v1922_v62 = vpop.permute.xlu1 %300 }
 0x15e   :  { %v1924_v63 = vpop.permute.xlu1 %324 }
 0x162   :  { %v1926_v0 = vpop.permute.xlu1 %348 }
 0x166   :  { %v1928_v1 = vpop.permute.xlu1 %372 }
 0x16a   :  { %v1930_v3 = vpop.permute.xlu1 %396 }
 0x16e   :  { %v1932_v7 = vpop.permute.xlu1 %420 }
 0x172   :  { %v1934_v8 = vpop.permute.xlu1 %491 }
 0x176   :  { %v1936_v9 = vpop.permute.xlu1 %513 }
 0x17a   :  { %v1938_v11 = vpop.permute.xlu1 %537 }
 0x18b   :  { %v551_v12 = vpop.permute.xlu1 %550 }
 0x18c   :  { %v554_v14 = vmul.f32 %v551_v12, %v1830_v13  ;;  %v553_v17 = vmul.f32 %v551_v12, %v1791_v41  ;;  %v555_v18 = vmul.f32 %v551_v12, %v1835_v16 }
 0x18e   :  { %561 = vrot.lane.b32.xlu1 %v554_v14, %s1650_s30  ;;  %559 = vrot.lane.b32.xlu0 %v553_v17, %s1650_s30 }
 0x192   :  { %574 = vperm.xlu1 %1580, %v1723_v2   ;;  %563 = vrot.lane.b32.xlu0 %v555_v18, %s1650_s30  ;;  %v1999_v18 = vpop.permute.xlu0 %145 }
 0x196   :  { %1581 = vset.pattern.permute.xlu1 %v1654_v19 }
 0x200   :  { %v1947_v20 = vpop.permute.xlu1 %561 }
 0x211   :  { %v575_v21 = vpop.permute.xlu1 %574 }
 0x212   :  { %v578_v22 = vmul.f32 %v575_v21, %v1830_v13  ;;  %v577_v23 = vmul.f32 %v575_v21, %v1791_v41  ;;  %v579_v24 = vmul.f32 %v575_v21, %v1835_v16  ;;  %v2006_v21 = vpop.permute.xlu0 %168 }
 0x213   :  { %2685 = vst [vmem:[#allocation16_spill] sm:$0xff] %v2006_v21  ;;  %v1673_v21 = vmov 20  }
 0x214   :  { %585 = vrot.lane.b32.xlu1 %v578_v22, %s1651_s5  ;;  %583 = vrot.lane.b32.xlu0 %v577_v23, %s1651_s5  ;;  %v1659_v23 = vmov 24  }
 0x216   :  { %v2008_v22 = vpop.permute.xlu0 %191 }
 0x217   :  { %2686 = vst [vmem:[#allocation17_spill] sm:$0xff] %v2008_v22 }
 0x218   :  { %598 = vperm.xlu1 %1581, %v1723_v2   ;;  %587 = vrot.lane.b32.xlu0 %v579_v24, %s1651_s5 }
 0x21a   :  { %v2010_v24 = vpop.permute.xlu0 %214 }
 0x21b   :  { %2687 = vst [vmem:[#allocation18_spill] sm:$0xff] %v2010_v24  ;;  %v1670_v24 = vmov 27  }
 0x21c   :  { %1583 = vset.pattern.permute.xlu1 %v1655_v25 }
 0x21e   :  { %v2012_v25 = vpop.permute.xlu0 %237 }
 0x21f   :  { %2688 = vst [vmem:[#allocation19_spill] sm:$0xff] %v2012_v25 }
 0x222   :  { %v2014_v26 = vpop.permute.xlu0 %260 }
 0x223   :  { %2689 = vst [vmem:[#allocation20_spill] sm:$0xff] %v2014_v26 }
 0x226   :  { %v2016_v28 = vpop.permute.xlu0 %302 }
 0x286   :  { %v1956_v27 = vpop.permute.xlu1 %585 }
 0x297   :  { %v599_v29 = vpop.permute.xlu1 %598 }
 0x298   :  { %v602_v30 = vmul.f32 %v599_v29, %v1830_v13  ;;  %v601_v32 = vmul.f32 %v599_v29, %v1791_v41  ;;  %v603_v34 = vmul.f32 %v599_v29, %v1835_v16  ;;  %v2018_v29 = vpop.permute.xlu0 %326 }
 0x29a   :  { %609 = vrot.lane.b32.xlu1 %v602_v30, %s1652_s6  ;;  %607 = vrot.lane.b32.xlu0 %v601_v32, %s1652_s6 }
 0x29c   :  { %v2020_v30 = vpop.permute.xlu0 %350 }
 0x29e   :  { %631 = vrot.lane.b32.xlu1 %v624_v33, %s1657_s7  ;;  %611 = vrot.lane.b32.xlu0 %v603_v34, %s1652_s6 }
 0x2a0   :  { %v2022_v32 = vpop.permute.xlu0 %374 }
 0x2a2   :  { %667 = vperm.xlu1 %1583, %v1723_v2   ;;  %633 = vrot.lane.b32.xlu0 %v628_v35, %s1657_s7 }
 0x2a4   :  { %v2024_v33 = vpop.permute.xlu0 %398 }
 0x2a6   :  { %660 = vperm.xlu0 %1582, %v1723_v2   ;;  %1585 = vset.pattern.permute.xlu1 %v1659_v23 }
 0x2a8   :  { %v2026_v34 = vpop.permute.xlu0 %422 }
 0x2a9   :  { %v425_v58 = vsel %vm262_vm10, %v1932_v7, %v2026_v34 }
 0x2aa   :  { %1584 = vset.pattern.permute.xlu0 %v1658_v36 }
 0x2ac   :  { %v2028_v35 = vpop.permute.xlu0 %489 }
 0x2b0   :  { %v2030_v36 = vpop.permute.xlu0 %515 }
 0x30c   :  { %v1989_v48 = vpop.permute.xlu1 %609 }
 0x310   :  { %v1995_v51 = vpop.permute.xlu1 %631 }
 0x321   :  { %v668_v12 = vpop.permute.xlu1 %667 }
 0x322   :  { %v670_v14 = vmul.f32 %v668_v12, %v1791_v41  ;;  %v671_v17 = vmul.f32 %v668_v12, %v1830_v13  ;;  %v672_v19 = vmul.f32 %v668_v12, %v1835_v16  ;;  %v2032_v12 = vpop.permute.xlu0 %539 }
 0x324   :  { %676 = vrot.lane.b32.xlu1 %v670_v14, %s1647_s27  ;;  %678 = vrot.lane.b32.xlu0 %v671_v17, %s1647_s27 }
 0x326   :  { %v2034_v14 = vpop.permute.xlu0 %559 }
 0x328   :  { %680 = vrot.lane.b32.xlu1 %v672_v19, %s1647_s27  ;;  %691 = vperm.xlu0 %1584, %v1723_v2  }
 0x32a   :  { %v2036_v17 = vpop.permute.xlu0 %563 }
 0x32e   :  { %v2038_v19 = vpop.permute.xlu0 %583 }
 0x332   :  { %v2040_v23 = vpop.permute.xlu0 %587 }
 0x336   :  { %v2042_v15 = vpop.permute.xlu0 %607 }
 0x33a   :  { %v2044_v44 = vpop.permute.xlu0 %611 }
 0x33e   :  { %v2046_v43 = vpop.permute.xlu0 %633 }
 0x342   :  { %v2048_v42 = vpop.permute.xlu0 %660 }
 0x343   :  { %2690 = vst [vmem:[#allocation21_spill] sm:$0xff] %v2048_v42 }
 0x396   :  { %v2050_v31 = vpop.permute.xlu0 %678  ;;  %v2059_v42 = vpop.permute.xlu1 %676 }
 0x397   :  { %2691 = vst [vmem:[#allocation22_spill] sm:$0xff] %v2050_v31  ;;  %2692 = vst [vmem:[#allocation23_spill] sm:$0xff] %v2059_v42 }
 0x39a   :  { %v2061_v31 = vpop.permute.xlu1 %680 }
 0x39b   :  { %2693 = vst [vmem:[#allocation24_spill] sm:$0xff] %v2061_v31 }
 0x3a7   :  { %v692_v61 = vpop.permute.xlu0 %691 }
 0x3a8   :  { %v696_v26 = vmul.f32 %v692_v61, %v1835_v16  ;;  %v694_v40 = vmul.f32 %v692_v61, %v1791_v41  ;;  %v695_v6 = vmul.f32 %v692_v61, %v1830_v13  ;;  %v1662_v61 = vmov 18  }
 0x3a9   :  { %1588 = vset.pattern.permute.xlu0 %v1662_v61  ;;  %v329_v61 = vsel %vm170_vm6, %v1924_v63, %v2018_v29 }
 0x3aa   :  { %704 = vrot.lane.b32.xlu0 %v696_v26, %s1648_s28  ;;  %700 = vrot.lane.b32.xlu1 %v694_v40, %s1648_s28 }
 0x3ae   :  { %702 = vrot.lane.b32.xlu1 %v695_v6, %s1648_s28 }
 0x3b2   :  { %715 = vperm.xlu1 %1585, %v1723_v2  }
 0x3b6   :  { %1586 = vset.pattern.permute.xlu1 %v1660_v60  ;;  %v1661_v60 = vmov 11  }
 0x41c   :  { %v2063_v25 = vpop.permute.xlu1 %700 }
 0x41d   :  { %2694 = vst [vmem:[#allocation25_spill] sm:$0xff] %v2063_v25 }
 0x420   :  { %v2065_v39 = vpop.permute.xlu1 %702 }
 0x421   :  { %2695 = vst [vmem:[#allocation26_spill] sm:$0xff] %v2065_v39 }
 0x431   :  { %v716_v59 = vpop.permute.xlu1 %715 }
 0x432   :  { %v719_v26 = vmul.f32 %v716_v59, %v1830_v13  ;;  %v718_v40 = vmul.f32 %v716_v59, %v1791_v41  ;;  %v720_v6 = vmul.f32 %v716_v59, %v1835_v16 }
 0x434   :  { %726 = vrot.lane.b32.xlu1 %v719_v26, %s1649_s29  ;;  %724 = vrot.lane.b32.xlu0 %v718_v40, %s1649_s29  ;;  %v1663_v26 = vmov 12   ;;  %v1664_v40 = vmov 19  }
 0x438   :  { %739 = vperm.xlu1 %1586, %v1723_v2   ;;  %728 = vrot.lane.b32.xlu0 %v720_v6, %s1649_s29  ;;  %v1665_v6 = vmov 25  }
 0x43c   :  { %1587 = vset.pattern.permute.xlu1 %v1661_v60  ;;  %v286_v60 = vmul.f32 %v1808_v55, %v1830_v13 }
 0x4a6   :  { %v2074_v31 = vpop.permute.xlu1 %726 }
 0x4a7   :  { %2696 = vst [vmem:[#allocation27_spill] sm:$0xff] %v2074_v31 }
 0x4b7   :  { %v740_v25 = vpop.permute.xlu1 %739 }
 0x4b8   :  { %v743_v39 = vmul.f32 %v740_v25, %v1830_v13  ;;  %v742_v42 = vmul.f32 %v740_v25, %v1791_v41  ;;  %v744_v59 = vmul.f32 %v740_v25, %v1835_v16  ;;  %v1667_v25 = vmov 13  }
 0x4ba   :  { %750 = vrot.lane.b32.xlu1 %v743_v39, %s1650_s30  ;;  %748 = vrot.lane.b32.xlu0 %v742_v42, %s1650_s30  ;;  %v1666_v39 = vmov 32   ;;  %v305_v42 = vsel %vm147_vm5, %v1922_v62, %v2016_v28 }
 0x4be   :  { %856 = vperm.xlu1 %1587, %v1723_v2   ;;  %752 = vrot.lane.b32.xlu0 %v744_v59, %s1650_s30  ;;  %v310_v59 = vadd.f32 %v305_v42, %v286_v60  ;;  %v494_v42 = vsel %vm147_vm5, %v2028_v35, %v1934_v8  ;;  %v475_v60 = vmul.f32 %v1820_v4, %v1830_v13 }
 0x4c0   :  { %v499_v31 = vadd.f32 %v494_v42, %v475_v60  ;;  %v590_v60 = vsel %vm239_vm9, %v1956_v27, %v2040_v23 }
 0x4c2   :  { %1589 = vset.pattern.permute.xlu1 %v1663_v26  ;;  %880 = vperm.xlu0 %1588, %v1723_v2   ;;  %v353_v26 = vsel %vm193_vm7, %v1926_v0, %v2020_v30 }
 0x4c3   :  { %1045 = vperm.xlu1 %1589, %v1723_v2  }
 0x4c6   :  { %1591 = vset.pattern.permute.xlu0 %v1664_v40  ;;  %v1668_v40 = vmov 45  }
 0x4c7   :  { %1590 = vset.pattern.permute.xlu1 %v1665_v6  ;;  %1069 = vperm.xlu0 %1591, %v1723_v2   ;;  %v334_v6 = vadd.f32 %v329_v61, %v310_v59  ;;  %v401_v61 = vsel %vm239_vm9, %v1930_v3, %v2024_v33  ;;  %v518_v59 = vsel %vm170_vm6, %v1936_v9, %v2030_v36 }
 0x4c8   :  { %904 = vperm.xlu1 %1590, %v1723_v2   ;;  %v523_v57 = vadd.f32 %v518_v59, %v499_v31  ;;  %v447_v31 = vsel %vm446_vm11, %v1822_v5, %v1788_v38 }
 0x4cb   :  { %1594 = vset.pattern.permute.xlu0 %v1666_v39  ;;  %v1669_v39 = vmov 38  }
 0x4cc   :  { %1592 = vset.pattern.permute.xlu1 %v1667_v25  ;;  %928 = vperm.xlu0 %1594, %v1723_v2   ;;  %v377_v25 = vsel %vm216_vm8, %v1928_v1, %v2022_v32 }
 0x4cd   :  { %1234 = vperm.xlu1 %1592, %v1723_v2  }
 0x4d0   :  { %1597 = vset.pattern.permute.xlu0 %v1668_v40  ;;  %v358_v40 = vadd.f32 %v353_v26, %v334_v6  ;;  %v542_v26 = vsel %vm193_vm7, %v1938_v11, %v2032_v12  ;;  %v1671_v6 = vmov 26  }
 0x4d1   :  { %1593 = vset.pattern.permute.xlu1 %v1669_v39  ;;  %787 = vperm.xlu0 %1597, %v1723_v2   ;;  %v547_v42 = vadd.f32 %v542_v26, %v523_v57 }
 0x4d2   :  { %763 = vperm.xlu1 %1593, %v1723_v2   ;;  %v382_v39 = vadd.f32 %v377_v25, %v358_v40  ;;  %v1672_v40 = vmov 34  }
 0x4d4   :  { %v406_v22 = vadd.f32 %v401_v61, %v382_v39  ;;  %v636_v61 = vsel %vm635_vm12, %v1995_v51, %v2046_v43  ;;  %v1676_v39 = vmov 48  }
 0x4d5   :  { %1600 = vset.pattern.permute.xlu0 %v1670_v24  ;;  %v566_v24 = vsel %vm216_vm8, %v1947_v20, %v2036_v17 }
 0x4d6   :  { %1595 = vset.pattern.permute.xlu1 %v1671_v6  ;;  %1282 = vperm.xlu0 %1600, %v1723_v2   ;;  %v430_v25 = vadd.f32 %v425_v58, %v406_v22  ;;  %v571_v6 = vadd.f32 %v566_v24, %v547_v42  ;;  %v614_v58 = vsel %vm262_vm10, %v1989_v48, %v2044_v44  ;;  %v1678_v24 = vmov 33  }
 0x4d7   :  { %1093 = vperm.xlu1 %1595, %v1723_v2   ;;  %v1680_v42 = vmov 6  }
 0x4d8   :  { %v452_v57 = vmul.f32 %v447_v31, %v430_v25  ;;  %v595_v22 = vadd.f32 %v590_v60, %v571_v6  ;;  %v1679_v25 = vmov 46   ;;  %v287_v60 = vmul.f32 %v1808_v55, %v1835_v16 }
 0x4d9   :  { %v1681_v6 = vmov 40  }
 0x4da   :  { %1603 = vset.pattern.permute.xlu0 %v1672_v40  ;;  %v619_v59 = vadd.f32 %v614_v58, %v595_v22  ;;  %v311_v40 = vadd.f32 %v2016_v28, %v287_v60  ;;  %v304_v58 = vsel %vm147_vm5, %v1904_v52, %v1922_v62  ;;  %v476_v22 = vmul.f32 %v1820_v4, %v1835_v16 }
 0x4db   :  { %1596 = vset.pattern.permute.xlu1 %v1673_v21  ;;  %1306 = vperm.xlu0 %1603, %v1723_v2   ;;  %v1675_v21 = vmov 39   ;;  %v328_v28 = vsel %vm170_vm6, %v1981_v10, %v1924_v63  ;;  %v474_v52 = vmul.f32 %v1820_v4, %v1791_v41  ;;  %v352_v63 = vsel %vm193_vm7, %v1983_v45, %v1926_v0 }
 0x4dc   :  { %1258 = vperm.xlu1 %1596, %v1723_v2   ;;  %v641_v26 = vmul.f32 %v636_v61, %v619_v59  ;;  %v335_v31 = vadd.f32 %v2018_v29, %v311_v40  ;;  %v285_v61 = vmul.f32 %v1808_v55, %v1791_v41  ;;  %v1682_v59 = vmov 47   ;;  %v1621_v55 = vld [vmem:[%s2653_s1] sm:$0xf] }
 0x4dd   :  { %v376_v4 = vsel %vm216_vm8, %v1985_v46, %v1928_v1  ;;  %v1683_v0 = vmov 41   ;;  %v400_v1 = vsel %vm239_vm9, %v1987_v47, %v1930_v3  ;;  %v541_v46 = vsel %vm193_vm7, %v1993_v50, %v1938_v11 }
 0x4de   :  { %v309_v62 = vadd.f32 %v304_v58, %v285_v61  ;;  %v1684_v11 = vmov 4  }
 0x4df   :  { %459 = vrot.lane.b32.xlu0 %v452_v57, %s1674_s8  ;;  %v359_v57 = vadd.f32 %v2020_v30, %v335_v31  ;;  %v493_v30 = vsel %vm147_vm5, %v1906_v53, %v2028_v35 }
 0x4e0   :  { %1598 = vset.pattern.permute.xlu1 %v1675_v21  ;;  %1606 = vset.pattern.permute.xlu0 %v1676_v39  ;;  %v498_v35 = vadd.f32 %v493_v30, %v474_v52 }
 0x4e1   :  { %952 = vperm.xlu1 %1598, %v1723_v2   ;;  %v383_v29 = vadd.f32 %v2022_v32, %v359_v57  ;;  %v333_v32 = vadd.f32 %v328_v28, %v309_v62 }
 0x4e3   :  { %648 = vrot.lane.b32.xlu0 %v641_v26, %s1677_s9  ;;  %v517_v26 = vsel %vm170_vm6, %v1908_v54, %v1936_v9  ;;  %v424_v54 = vsel %vm262_vm10, %v1991_v49, %v1932_v7  ;;  %v565_v9 = vsel %vm216_vm8, %v2034_v14, %v1947_v20  ;;  %v613_v20 = vsel %vm262_vm10, %v2042_v15, %v1989_v48 }
 0x4e5   :  { %1599 = vset.pattern.permute.xlu1 %v1678_v24 }
 0x4e6   :  { %1117 = vperm.xlu1 %1599, %v1723_v2  }
 0x4e7   :  { %1354 = vperm.xlu0 %1606, %v1723_v2  }
 0x4ea   :  { %1601 = vset.pattern.permute.xlu1 %v1679_v25 }
 0x4eb   :  { %976 = vperm.xlu1 %1601, %v1723_v2   ;;  %1609 = vset.pattern.permute.xlu0 %v1680_v42 }
 0x4ec   :  { %1227 = vperm.xlu0 %1609, %v1723_v2  }
 0x4ef   :  { %1602 = vset.pattern.permute.xlu1 %v1681_v6 }
 0x4f0   :  { %1141 = vperm.xlu1 %1602, %v1723_v2   ;;  %1610 = vset.pattern.permute.xlu0 %v1676_v39  ;;  %v500_v2 = vadd.f32 %v1934_v8, %v476_v22  ;;  %v407_v8 = vadd.f32 %v2024_v33, %v383_v29  ;;  %v357_v39 = vadd.f32 %v352_v63, %v333_v32 }
 0x4f2   :  { %v524_v10 = vadd.f32 %v2030_v36, %v500_v2  ;;  %v431_v53 = vadd.f32 %v2026_v34, %v407_v8  ;;  %v381_v33 = vadd.f32 %v376_v4, %v357_v39  ;;  %v522_v36 = vadd.f32 %v517_v26, %v498_v35 }
 0x4f4   :  { %1604 = vset.pattern.permute.xlu1 %v1682_v59  ;;  %v548_v21 = vadd.f32 %v2032_v12, %v524_v10  ;;  %v453_v34 = vmul.f32 %v1788_v38, %v431_v53  ;;  %v546_v24 = vadd.f32 %v541_v46, %v522_v36  ;;  %v589_v38 = vsel %vm239_vm9, %v2038_v19, %v1956_v27 }
 0x4f5   :  { %1165 = vperm.xlu1 %1604, %v1621_v55   ;;  %v1685_v19 = vmov 5  }
 0x4f6   :  { %v572_v45 = vadd.f32 %v2036_v17, %v548_v21  ;;  %v405_v17 = vadd.f32 %v400_v1, %v381_v33  ;;  %v570_v50 = vadd.f32 %v565_v9, %v546_v24 }
 0x4f8   :  { %v596_v12 = vadd.f32 %v2040_v23, %v572_v45  ;;  %v429_v47 = vadd.f32 %v424_v54, %v405_v17  ;;  %v594_v49 = vadd.f32 %v589_v38, %v570_v50  ;;  %v149_v17 = vsel %vm147_vm5, %v1910_v56, %v1999_v18  ;;  %v2697_v50 = vld [vmem:[#allocation16_spill] sm:$0xff] }
 0x4f9   :  { %1605 = vset.pattern.permute.xlu1 %v1683_v0  ;;  %v130_v38 = vmul.f32 %v1786_v37, %v1830_v13 }
 0x4fa   :  { %1330 = vperm.xlu1 %1605, %v1621_v55   ;;  %v620_v3 = vadd.f32 %v2044_v44, %v596_v12  ;;  %v451_v44 = vmul.f32 %v1822_v5, %v429_v47  ;;  %v618_v14 = vadd.f32 %v613_v20, %v594_v49  ;;  %v2699_v49 = vld [vmem:[#allocation17_spill] sm:$0xff] }
 0x4fb   :  { %v153_v18 = vadd.f32 %v149_v17, %v130_v38  ;;  %v2711_v17 = vld [vmem:[#allocation13_spill] sm:$0xff]  ;;  %v2712_v38 = vld [vmem:[#allocation14_spill] sm:$0xff] }
 0x4fc   :  { %v642_v7 = vmul.f32 %v2046_v43, %v620_v3  ;;  %v640_v27 = vmul.f32 %v1995_v51, %v618_v14  ;;  %v2214_v43 = vpop.permute.xlu0 %704 }
 0x4fe   :  { %461 = vrot.lane.b32.xlu1 %v453_v34, %s1674_s8 }
 0x4ff   :  { %1607 = vset.pattern.permute.xlu1 %v1684_v11 }
 0x500   :  { %v2216_v23 = vpop.permute.xlu0 %724 }
 0x502   :  { %650 = vrot.lane.b32.xlu1 %v642_v7, %s1677_s9  ;;  %v2698_v7 = vld [vmem:[#allocation5_spill] sm:$0xff] }
 0x503   :  { %v172_v20 = vsel %vm170_vm6, %v2698_v7, %v2697_v50 }
 0x504   :  { %v2218_v15 = vpop.permute.xlu0 %728 }
 0x506   :  { %457 = vrot.lane.b32.xlu1 %v451_v44, %s1674_s8  ;;  %v2700_v44 = vld [vmem:[#allocation6_spill] sm:$0xff] }
 0x507   :  { %v195_v14 = vsel %vm193_vm7, %v2700_v44, %v2699_v49 }
 0x50a   :  { %646 = vrot.lane.b32.xlu1 %v640_v27, %s1677_s9 }
 0x50e   :  { %849 = vperm.xlu1 %1607, %v1621_v55  }
 0x512   :  { %1608 = vset.pattern.permute.xlu1 %v1685_v19 }
 0x513   :  { %1038 = vperm.xlu1 %1608, %v1621_v55  }
 0x52c   :  { %v2220_v48 = vpop.permute.xlu0 %748  ;;  %v2222_v5 = vpop.permute.xlu1 %750 }
 0x530   :  { %v2224_v25 = vpop.permute.xlu0 %752 }
 0x53d   :  { %v857_v42 = vpop.permute.xlu1 %856 }
 0x53e   :  { %v859_v51 = vmul.f32 %v857_v42, %v1791_v41  ;;  %v861_v60 = vmul.f32 %v857_v42, %v1835_v16  ;;  %v860_v6 = vmul.f32 %v857_v42, %v1830_v13  ;;  %v176_v42 = vadd.f32 %v172_v20, %v153_v18 }
 0x540   :  { %865 = vrot.lane.b32.xlu1 %v859_v51, %s1647_s27  ;;  %869 = vrot.lane.b32.xlu0 %v861_v60, %s1647_s27  ;;  %v2701_v51 = vld [vmem:[#allocation18_spill] sm:$0xff]  ;;  %v2702_v60 = vld [vmem:[#allocation7_spill] sm:$0xff] }
 0x541   :  { %v881_v40 = vpop.permute.xlu0 %880 }
 0x542   :  { %v884_v31 = vmul.f32 %v881_v40, %v1830_v13  ;;  %v1046_v58 = vpop.permute.xlu1 %1045  ;;  %v883_v57 = vmul.f32 %v881_v40, %v1791_v41  ;;  %v885_v28 = vmul.f32 %v881_v40, %v1835_v16  ;;  %v218_v40 = vsel %vm216_vm8, %v2702_v60, %v2701_v51 }
 0x543   :  { %v1048_v22 = vmul.f32 %v1046_v58, %v1791_v41  ;;  %v1050_v29 = vmul.f32 %v1046_v58, %v1835_v16  ;;  %v1049_v59 = vmul.f32 %v1046_v58, %v1830_v13 }
 0x544   :  { %867 = vrot.lane.b32.xlu1 %v860_v6, %s1647_s27  ;;  %891 = vrot.lane.b32.xlu0 %v884_v31, %s1648_s28  ;;  %v199_v31 = vadd.f32 %v195_v14, %v176_v42  ;;  %v2713_v14 = vld [vmem:[#allocation15_spill] sm:$0xff] }
 0x546   :  { %v1070_v62 = vpop.permute.xlu0 %1069 }
 0x547   :  { %v905_v61 = vpop.permute.xlu1 %904  ;;  %v1072_v55 = vmul.f32 %v1070_v62, %v1791_v41  ;;  %v1074_v8 = vmul.f32 %v1070_v62, %v1835_v16  ;;  %v1073_v4 = vmul.f32 %v1070_v62, %v1830_v13  ;;  %v222_v62 = vadd.f32 %v218_v40, %v199_v31 }
 0x548   :  { %1054 = vrot.lane.b32.xlu0 %v1048_v22, %s1647_s27  ;;  %889 = vrot.lane.b32.xlu1 %v883_v57, %s1648_s28  ;;  %v908_v52 = vmul.f32 %v905_v61, %v1830_v13  ;;  %v907_v63 = vmul.f32 %v905_v61, %v1791_v41  ;;  %v909_v10 = vmul.f32 %v905_v61, %v1835_v16  ;;  %v2703_v57 = vld [vmem:[#allocation10_spill] sm:$0xff]  ;;  %v2704_v61 = vld [vmem:[#allocation19_spill] sm:$0xff] }
 0x549   :  { %v148_v22 = vsel %vm147_vm5, %v2703_v57, %v1910_v56  ;;  %v2708_v56 = vld [vmem:[#allocation20_spill] sm:$0xff] }
 0x54b   :  { %v929_v33 = vpop.permute.xlu0 %928 }
 0x54c   :  { %v1235_v2 = vpop.permute.xlu1 %1234  ;;  %1058 = vrot.lane.b32.xlu0 %v1050_v29, %s1647_s27  ;;  %893 = vrot.lane.b32.xlu1 %v885_v28, %s1648_s28  ;;  %v932_v46 = vmul.f32 %v929_v33, %v1830_v13  ;;  %v931_v12 = vmul.f32 %v929_v33, %v1791_v41  ;;  %v933_v24 = vmul.f32 %v929_v33, %v1835_v16  ;;  %v2705_v28 = vld [vmem:[#allocation8_spill] sm:$0xff] }
 0x54d   :  { %v1238_v53 = vmul.f32 %v1235_v2, %v1830_v13  ;;  %v1237_v21 = vmul.f32 %v1235_v2, %v1791_v41  ;;  %v1239_v0 = vmul.f32 %v1235_v2, %v1835_v16  ;;  %v241_v29 = vsel %vm239_vm9, %v2705_v28, %v2704_v61  ;;  %v2372_v61 = vld [vmem:[%s2655_s2] sm:$0x7f] }
 0x54e   :  { %v240_v50 = vsel %vm239_vm9, %v2712_v38, %v2705_v28 }
 0x550   :  { %915 = vrot.lane.b32.xlu0 %v908_v52, %s1649_s29  ;;  %1056 = vrot.lane.b32.xlu1 %v1049_v59, %s1647_s27  ;;  %v788_v36 = vpop.permute.xlu0 %787  ;;  %v129_v52 = vmul.f32 %v1786_v37, %v1791_v41  ;;  %v2710_v37 = vld [vmem:[#allocation12_spill] sm:$0xff] }
 0x551   :  { %v764_v30 = vpop.permute.xlu1 %763  ;;  %v790_v2 = vmul.f32 %v788_v36, %v1791_v41 }
 0x552   :  { %v766_v39 = vmul.f32 %v764_v30, %v1791_v41  ;;  %v768_v45 = vmul.f32 %v764_v30, %v1835_v16  ;;  %v767_v34 = vmul.f32 %v764_v30, %v1830_v13  ;;  %v2706_v30 = vld [vmem:[#allocation3_spill] sm:$0xff] }
 0x554   :  { %913 = vrot.lane.b32.xlu1 %v907_v63, %s1649_s29  ;;  %1078 = vrot.lane.b32.xlu0 %v1072_v55, %s1648_s28  ;;  %v2321_v55 = vsub.s32 0, %v2706_v30  ;;  %v2707_v63 = vld [vmem:[#allocation11_spill] sm:$0xff] }
 0x555   :  { %v2287_v11 = vpop.permute.xlu0 %1282 }
 0x556   :  { %v1094_v32 = vpop.permute.xlu1 %1093  ;;  %v272_v28 = vrot.slane %v2372_v61, %v2321_v55 }
 0x557   :  { %v1096_v54 = vmul.f32 %v1094_v32, %v1791_v41  ;;  %v1098_v3 = vmul.f32 %v1094_v32, %v1835_v16  ;;  %v1097_v27 = vmul.f32 %v1094_v32, %v1830_v13 }
 0x558   :  { %917 = vrot.lane.b32.xlu1 %v909_v10, %s1649_s29  ;;  %1082 = vrot.lane.b32.xlu0 %v1074_v8, %s1648_s28  ;;  %v171_v8 = vsel %vm170_vm6, %v2707_v63, %v2698_v7  ;;  %v2709_v10 = vld [vmem:[#allocation9_spill] sm:$0xff]  ;;  %v791_v7 = vmul.f32 %v788_v36, %v1830_v13  ;;  %v812_v63 = vsub.s32 3, %v2706_v30 }
 0x559   :  { %v264_v32 = vsel %vm262_vm10, %v2709_v10, %v2708_v56 }
 0x55a   :  { %v2308_v58 = vpop.permute.xlu0 %1306 }
 0x55b   :  { %v1259_v35 = vpop.permute.xlu1 %1258 }
 0x55c   :  { %1080 = vrot.lane.b32.xlu1 %v1073_v4, %s1648_s28  ;;  %1245 = vrot.lane.b32.xlu0 %v1238_v53, %s1647_s27  ;;  %v1262_v19 = vmul.f32 %v1259_v35, %v1830_v13  ;;  %v1261_v59 = vmul.f32 %v1259_v35, %v1791_v41  ;;  %v152_v4 = vadd.f32 %v148_v22, %v129_v52 }
 0x55d   :  { %v245_v53 = vadd.f32 %v241_v29, %v222_v62 }
 0x55e   :  { %v175_v33 = vadd.f32 %v171_v8, %v152_v4 }
 0x560   :  { %v2260_v26 = vpop.permute.xlu1 %952  ;;  %1243 = vrot.lane.b32.xlu1 %v1237_v21, %s1647_s27  ;;  %772 = vrot.lane.b32.xlu0 %v766_v39, %s1651_s5  ;;  %v194_v39 = vsel %vm193_vm7, %v2710_v37, %v2700_v44  ;;  %v1285_v37 = vmul.f32 %v2287_v11, %v1791_v41 }
 0x561   :  { %v956_v20 = vmul.f32 %v2260_v26, %v1830_v13 }
 0x564   :  { %1247 = vrot.lane.b32.xlu1 %v1239_v0, %s1647_s27  ;;  %776 = vrot.lane.b32.xlu0 %v768_v45, %s1651_s5  ;;  %v792_v0 = vmul.f32 %v788_v36, %v1835_v16  ;;  %v1263_v45 = vmul.f32 %v1259_v35, %v1835_v16  ;;  %v198_v35 = vadd.f32 %v194_v39, %v175_v33 }
 0x565   :  { %v2268_v1 = vpop.permute.xlu1 %1117 }
 0x566   :  { %v1120_v40 = vmul.f32 %v2268_v1, %v1791_v41 }
 0x568   :  { %774 = vrot.lane.b32.xlu1 %v767_v34, %s1651_s5  ;;  %939 = vrot.lane.b32.xlu0 %v932_v46, %s1650_s30  ;;  %v268_v46 = vadd.f32 %v264_v32, %v245_v53  ;;  %v460_v34 = vpop.permute.xlu0 %459  ;;  %v813_v53 = vrot.slane %v2372_v61, %v812_v63 }
 0x56a   :  { %v2276_v9 = vpop.permute.xlu1 %976 }
 0x56b   :  { %v979_v39 = vmul.f32 %v2276_v9, %v1791_v41  ;;  %v980_v33 = vmul.f32 %v2276_v9, %v1830_v13 }
 0x56c   :  { %1102 = vrot.lane.b32.xlu0 %v1096_v54, %s1649_s29  ;;  %937 = vrot.lane.b32.xlu1 %v931_v12, %s1650_s30  ;;  %v2341_v12 = vld [vmem:[%s2655_s2 + $0x8] sm:$0x7f]  ;;  %v649_v42 = vpop.permute.xlu0 %648  ;;  %s1686_s2 = smov 3  }
 0x56d   :  { %v276_v54 = vrot.slane %v2341_v12, %v2321_v55 }
 0x56f   :  { %v2289_v47 = vpop.permute.xlu1 %1141  ;;  %v278_v44 = vmul.f32 %v276_v54, %v268_v46  ;;  %v1309_v46 = vmul.f32 %v2308_v58, %v1791_v41  ;;  %v1001_v54 = vsub.s32 4, %v2706_v30 }
 0x570   :  { %1106 = vrot.lane.b32.xlu0 %v1098_v3, %s1649_s29  ;;  %941 = vrot.lane.b32.xlu1 %v933_v24, %s1650_s30  ;;  %v217_v24 = vsel %vm216_vm8, %v2711_v17, %v2702_v60  ;;  %v955_v60 = vmul.f32 %v2260_v26, %v1791_v41  ;;  %v1146_v17 = vmul.f32 %v2289_v47, %v1835_v16 }
 0x571   :  { %v221_v49 = vadd.f32 %v217_v24, %v198_v35  ;;  %v1006_v24 = vrot.slane %v2341_v12, %v1001_v54  ;;  %v1310_v35 = vmul.f32 %v2308_v58, %v1830_v13 }
 0x574   :  { %v2304_v6 = vpop.permute.xlu1 %1165  ;;  %1269 = vrot.lane.b32.xlu0 %v1262_v19, %s1648_s28  ;;  %1104 = vrot.lane.b32.xlu1 %v1097_v27, %s1649_s29  ;;  %v263_v27 = vsel %vm262_vm10, %v2713_v14, %v2709_v10  ;;  %v244_v19 = vadd.f32 %v240_v50, %v221_v49  ;;  %v1286_v10 = vmul.f32 %v2287_v11, %v1830_v13  ;;  %v1190_v49 = vsub.s32 5, %v2706_v30 }
 0x575   :  { %v1002_v50 = vrot.slane %v2372_v61, %v1001_v54  ;;  %v1170_v14 = vmul.f32 %v2304_v6, %v1835_v16 }
 0x576   :  { %v267_v57 = vadd.f32 %v263_v27, %v244_v19 }
 0x578   :  { %1267 = vrot.lane.b32.xlu1 %v1261_v59, %s1648_s28  ;;  %796 = vrot.lane.b32.xlu0 %v790_v2, %s1652_s6  ;;  %v957_v2 = vmul.f32 %v2260_v26, %v1835_v16  ;;  %v1122_v59 = vmul.f32 %v2268_v1, %v1835_v16  ;;  %v277_v62 = vmul.f32 %v272_v28, %v267_v57 }
 0x579   :  { %v2331_v21 = vpop.permute.xlu1 %1330  ;;  %v1121_v26 = vmul.f32 %v2268_v1, %v1830_v13  ;;  %v1287_v1 = vmul.f32 %v2287_v11, %v1835_v16  ;;  %v1145_v11 = vmul.f32 %v2289_v47, %v1830_v13 }
 0x57a   :  { %v1335_v27 = vmul.f32 %v2331_v21, %v1835_v16 }
 0x57c   :  { %1271 = vrot.lane.b32.xlu1 %v1263_v45, %s1648_s28  ;;  %800 = vrot.lane.b32.xlu0 %v792_v0, %s1652_s6  ;;  %v817_v0 = vrot.slane %v2341_v12, %v812_v63  ;;  %v981_v45 = vmul.f32 %v2276_v9, %v1835_v16  ;;  %v1311_v9 = vmul.f32 %v2308_v58, %v1835_v16 }
 0x57d   :  { %v462_v3 = vpop.permute.xlu1 %461  ;;  %v1333_v58 = vmul.f32 %v2331_v21, %v1791_v41 }
 0x57e   :  { %v465_v18 = vsel %vm463_vm13, %v460_v34, %v462_v3  ;;  %v1355_v3 = vpop.permute.xlu0 %1354 }
 0x57f   :  { %v469_v51 = vadd.f32 %v465_v18, %v278_v44 }
 0x580   :  { %798 = vrot.lane.b32.xlu1 %v791_v7, %s1652_s6  ;;  %963 = vrot.lane.b32.xlu0 %v956_v20, %s1651_s5  ;;  %v1168_v20 = vmul.f32 %v2304_v6, %v1791_v41 }
 0x581   :  { %v651_v36 = vpop.permute.xlu1 %650 }
 0x582   :  { %v654_v31 = vsel %vm652_vm14, %v649_v42, %v651_v36  ;;  %v2436_v7 = vpop.permute.xlu0 %1227  ;;  %v1195_v36 = vrot.slane %v2341_v12, %v1190_v49 }
 0x583   :  { %v2367_v22 = vadd.f32 %v654_v31, %v469_v51 }
 0x584   :  { %961 = vrot.lane.b32.xlu1 %v955_v60, %s1651_s5  ;;  %1126 = vrot.lane.b32.xlu0 %v1120_v40, %s1650_s30  ;;  %v1334_v60 = vmul.f32 %v2331_v21, %v1830_v13  ;;  %v1379_v21 = vsub.s32 6, %v2706_v30 }
 0x585   :  { %v458_v29 = vpop.permute.xlu1 %457 }
 0x586   :  { %v464_v52 = vsel %vm463_vm13, %v458_v29, %v460_v34  ;;  %v1144_v34 = vmul.f32 %v2289_v47, %v1791_v41  ;;  %v1169_v47 = vmul.f32 %v2304_v6, %v1830_v13 }
 0x587   :  { %v468_v8 = vadd.f32 %v464_v52, %v277_v62  ;;  %v1191_v52 = vrot.slane %v2372_v61, %v1190_v49  ;;  %v1358_v62 = vmul.f32 %v1355_v3, %v1830_v13 }
 0x588   :  { %965 = vrot.lane.b32.xlu1 %v957_v2, %s1651_s5  ;;  %1130 = vrot.lane.b32.xlu0 %v1122_v59, %s1650_s30 }
 0x589   :  { %v647_v56 = vpop.permute.xlu1 %646 }
 0x58a   :  { %v653_v32 = vsel %vm652_vm14, %v647_v56, %v649_v42 }
 0x58b   :  { %v2391_v4 = vadd.f32 %v653_v32, %v468_v8 }
 0x58c   :  { %1128 = vrot.lane.b32.xlu1 %v1121_v26, %s1650_s30  ;;  %1293 = vrot.lane.b32.xlu0 %v1286_v10, %s1649_s29  ;;  %v1380_v26 = vrot.slane %v2372_v61, %v1379_v21 }
 0x58d   :  { %v850_v38 = vpop.permute.xlu1 %849 }
 0x58e   :  { %v854_v44 = vmul.f32 %v850_v38, %v1835_v16  ;;  %v852_v40 = vmul.f32 %v850_v38, %v1791_v41  ;;  %v853_v31 = vmul.f32 %v850_v38, %v1830_v13  ;;  %v1384_v38 = vrot.slane %v2341_v12, %v1379_v21 }
 0x590   :  { %820 = vrot.lane.b32.xlu0 %v813_v53, %s1686_s2  ;;  %1291 = vrot.lane.b32.xlu1 %v1285_v37, %s1649_s29  ;;  %v1357_v53 = vmul.f32 %v1355_v3, %v1791_v41 }
 0x592   :  { %v1039_v18 = vpop.permute.xlu1 %1038 }
 0x593   :  { %v1043_v32 = vmul.f32 %v1039_v18, %v1835_v16  ;;  %v1042_v61 = vmul.f32 %v1039_v18, %v1830_v13 }
 0x594   :  { %985 = vrot.lane.b32.xlu0 %v979_v39, %s1652_s6  ;;  %1295 = vrot.lane.b32.xlu1 %v1287_v1, %s1649_s29 }
 0x598   :  { %989 = vrot.lane.b32.xlu0 %v981_v45, %s1652_s6  ;;  %822 = vrot.lane.b32.xlu1 %v817_v0, %s1686_s2 }
 0x59c   :  { %1152 = vrot.lane.b32.xlu0 %v1145_v11, %s1651_s5  ;;  %987 = vrot.lane.b32.xlu1 %v980_v33, %s1652_s6  ;;  %v1359_v11 = vmul.f32 %v1355_v3, %v1835_v16 }
 0x5a0   :  { %1150 = vrot.lane.b32.xlu1 %v1144_v34, %s1651_s5  ;;  %1315 = vrot.lane.b32.xlu0 %v1309_v46, %s1650_s30  ;;  %v1041_v46 = vmul.f32 %v1039_v18, %v1791_v41 }
 0x5a4   :  { %1154 = vrot.lane.b32.xlu1 %v1146_v17, %s1651_s5  ;;  %1319 = vrot.lane.b32.xlu0 %v1311_v9, %s1650_s30 }
 0x5a8   :  { %1317 = vrot.lane.b32.xlu1 %v1310_v35, %s1650_s30  ;;  %1011 = vrot.lane.b32.xlu0 %v1006_v24, %s1687_s15 }
 0x5ac   :  { %1009 = vrot.lane.b32.xlu1 %v1002_v50, %s1687_s15  ;;  %1176 = vrot.lane.b32.xlu0 %v1169_v47, %s1652_s6 }
 0x5b0   :  { %1174 = vrot.lane.b32.xlu1 %v1168_v20, %s1652_s6  ;;  %1339 = vrot.lane.b32.xlu0 %v1333_v58, %s1651_s5 }
 0x5b2   :  { %v866_v19 = vpop.permute.xlu1 %865  ;;  %v870_v42 = vpop.permute.xlu0 %869 }
 0x5b3   :  { %v878_v51 = vadd.f32 %v870_v42, %v854_v44 }
 0x5b4   :  { %1178 = vrot.lane.b32.xlu1 %v1170_v14, %s1652_s6  ;;  %1343 = vrot.lane.b32.xlu0 %v1335_v27, %s1651_s5 }
 0x5b6   :  { %v868_v6 = vpop.permute.xlu1 %867  ;;  %v892_v57 = vpop.permute.xlu0 %891 }
 0x5b7   :  { %v871_v28 = vsel %vm147_vm5, %v866_v19, %v868_v6  ;;  %v872_v29 = vsel %vm147_vm5, %v868_v6, %v870_v42 }
 0x5b8   :  { %v876_v2 = vadd.f32 %v871_v28, %v852_v40  ;;  %v877_v59 = vadd.f32 %v872_v29, %v853_v31  ;;  %1341 = vrot.lane.b32.xlu1 %v1334_v60, %s1651_s5  ;;  %1200 = vrot.lane.b32.xlu0 %v1195_v36, %s1688_s16 }
 0x5ba   :  { %v890_v63 = vpop.permute.xlu1 %889  ;;  %v1055_v8 = vpop.permute.xlu0 %1054 }
 0x5bb   :  { %v895_v56 = vsel %vm170_vm6, %v890_v63, %v892_v57 }
 0x5bc   :  { %v900_v10 = vadd.f32 %v895_v56, %v876_v2  ;;  %1198 = vrot.lane.b32.xlu1 %v1191_v52, %s1688_s16  ;;  %1365 = vrot.lane.b32.xlu0 %v1358_v62, %s1652_s6 }
 0x5be   :  { %v894_v37 = vpop.permute.xlu1 %893  ;;  %v1059_v1 = vpop.permute.xlu0 %1058 }
 0x5bf   :  { %v896_v39 = vsel %vm170_vm6, %v892_v57, %v894_v37  ;;  %v902_v0 = vadd.f32 %v894_v37, %v878_v51  ;;  %v1067_v45 = vadd.f32 %v1059_v1, %v1043_v32 }
 0x5c0   :  { %v901_v33 = vadd.f32 %v896_v39, %v877_v59  ;;  %1363 = vrot.lane.b32.xlu1 %v1357_v53, %s1652_s6  ;;  %1387 = vrot.lane.b32.xlu0 %v1380_v26, %s1689_s17  ;;  %v1230_v53 = vmul.f32 %v2436_v7, %v1791_v41 }
 0x5c2   :  { %v1057_v34 = vpop.permute.xlu1 %1056  ;;  %v916_v54 = vpop.permute.xlu0 %915 }
 0x5c3   :  { %v1060_v9 = vsel %vm147_vm5, %v1055_v8, %v1057_v34  ;;  %v1061_v17 = vsel %vm147_vm5, %v1057_v34, %v1059_v1 }
 0x5c4   :  { %v1065_v24 = vadd.f32 %v1060_v9, %v1041_v46  ;;  %v1066_v35 = vadd.f32 %v1061_v17, %v1042_v61  ;;  %1367 = vrot.lane.b32.xlu1 %v1359_v11, %s1652_s6  ;;  %v1231_v46 = vmul.f32 %v2436_v7, %v1830_v13 }
 0x5c6   :  { %v914_v50 = vpop.permute.xlu1 %913  ;;  %v1079_v47 = vpop.permute.xlu0 %1078 }
 0x5c7   :  { %v919_v3 = vsel %vm193_vm7, %v914_v50, %v916_v54 }
 0x5c8   :  { %v2478_v20 = vadd.f32 %v919_v3, %v900_v10  ;;  %1389 = vrot.lane.b32.xlu1 %v1384_v38, %s1689_s17  ;;  %v2714_v3 = vld [vmem:[#allocation22_spill] sm:$0xff] }
 0x5ca   :  { %v918_v58 = vpop.permute.xlu1 %917  ;;  %v1083_v18 = vpop.permute.xlu0 %1082 }
 0x5cb   :  { %v920_v49 = vsel %vm193_vm7, %v916_v54, %v918_v58  ;;  %v2481_v44 = vadd.f32 %v918_v58, %v902_v0  ;;  %v1091_v14 = vadd.f32 %v1083_v18, %v1067_v45  ;;  %v2715_v58 = vld [vmem:[#allocation23_spill] sm:$0xff] }
 0x5cc   :  { %v2483_v27 = vadd.f32 %v920_v49, %v901_v33  ;;  %v1232_v33 = vmul.f32 %v2436_v7, %v1835_v16  ;;  %v2716_v7 = vld [vmem:[#allocation21_spill] sm:$0xff] }
 0x5cd   :  { %v663_v49 = vmul.f32 %v2716_v7, %v1791_v41 }
 0x5ce   :  { %v1081_v19 = vpop.permute.xlu1 %1080  ;;  %v1246_v42 = vpop.permute.xlu0 %1245 }
 0x5cf   :  { %v1084_v12 = vsel %vm170_vm6, %v1079_v47, %v1081_v19  ;;  %v1085_v51 = vsel %vm170_vm6, %v1081_v19, %v1083_v18  ;;  %v682_v18 = vsel %vm147_vm5, %v2715_v58, %v2714_v3  ;;  %v2718_v19 = vld [vmem:[#allocation25_spill] sm:$0xff] }
 0x5d0   :  { %v1089_v36 = vadd.f32 %v1084_v12, %v1065_v24  ;;  %v1090_v60 = vadd.f32 %v1085_v51, %v1066_v35 }
 0x5d2   :  { %v1244_v40 = vpop.permute.xlu1 %1243  ;;  %v773_v31 = vpop.permute.xlu0 %772 }
 0x5d3   :  { %v1249_v6 = vsel %vm147_vm5, %v1244_v40, %v1246_v42 }
 0x5d4   :  { %v1254_v39 = vadd.f32 %v1249_v6, %v1230_v53 }
 0x5d6   :  { %v1248_v57 = vpop.permute.xlu1 %1247  ;;  %v2488_v28 = vpop.permute.xlu0 %776 }
 0x5d7   :  { %v1250_v29 = vsel %vm147_vm5, %v1246_v42, %v1248_v57  ;;  %v1256_v34 = vadd.f32 %v1248_v57, %v1232_v33  ;;  %v754_v57 = vsel %vm216_vm8, %v2220_v48, %v2222_v5 }
 0x5d8   :  { %v1255_v54 = vadd.f32 %v1250_v29, %v1231_v46 }
 0x5da   :  { %v2491_v2 = vpop.permute.xlu1 %774  ;;  %v2493_v59 = vpop.permute.xlu0 %939 }
 0x5de   :  { %v2495_v52 = vpop.permute.xlu1 %937  ;;  %v1103_v21 = vpop.permute.xlu0 %1102 }
 0x5e2   :  { %v2497_v62 = vpop.permute.xlu1 %941  ;;  %v1107_v63 = vpop.permute.xlu0 %1106 }
 0x5e3   :  { %v2499_v8 = vadd.f32 %v1107_v63, %v1091_v14  ;;  %v2717_v14 = vld [vmem:[#allocation26_spill] sm:$0xff] }
 0x5e4   :  { %v706_v42 = vsel %vm170_vm6, %v2718_v19, %v2717_v14 }
 0x5e6   :  { %v1105_v56 = vpop.permute.xlu1 %1104  ;;  %v1270_v10 = vpop.permute.xlu0 %1269 }
 0x5e7   :  { %v1108_v26 = vsel %vm193_vm7, %v1103_v21, %v1105_v56  ;;  %v1109_v32 = vsel %vm193_vm7, %v1105_v56, %v1107_v63  ;;  %v778_v63 = vsel %vm239_vm9, %v773_v31, %v2491_v2  ;;  %v665_v56 = vmul.f32 %v2716_v7, %v1835_v16 }
 0x5e8   :  { %v2505_v37 = vadd.f32 %v1108_v26, %v1089_v36  ;;  %v2507_v1 = vadd.f32 %v1109_v32, %v1090_v60  ;;  %v687_v36 = vadd.f32 %v682_v18, %v663_v49  ;;  %v2719_v60 = vld [vmem:[#allocation27_spill] sm:$0xff]  ;;  %v664_v32 = vmul.f32 %v2716_v7, %v1830_v13 }
 0x5e9   :  { %v730_v40 = vsel %vm193_vm7, %v2216_v23, %v2719_v60  ;;  %v707_v16 = vsel %vm170_vm6, %v2717_v14, %v2214_v43  ;;  %v731_v13 = vsel %vm193_vm7, %v2719_v60, %v2218_v15 }
 0x5ea   :  { %v1268_v0 = vpop.permute.xlu1 %1267  ;;  %v797_v45 = vpop.permute.xlu0 %796  ;;  %v711_v6 = vadd.f32 %v706_v42, %v687_v36 }
 0x5eb   :  { %v1273_v11 = vsel %vm170_vm6, %v1268_v0, %v1270_v10 }
 0x5ec   :  { %v2514_v61 = vadd.f32 %v1273_v11, %v1254_v39  ;;  %v735_v21 = vadd.f32 %v730_v40, %v711_v6 }
 0x5ee   :  { %v1272_v9 = vpop.permute.xlu1 %1271  ;;  %v801_v17 = vpop.permute.xlu0 %800  ;;  %v759_v26 = vadd.f32 %v754_v57, %v735_v21 }
 0x5ef   :  { %v1274_v24 = vsel %vm170_vm6, %v1270_v10, %v1272_v9  ;;  %v2517_v35 = vadd.f32 %v1272_v9, %v1256_v34  ;;  %v2720_v10 = vld [vmem:[#allocation24_spill] sm:$0xff]  ;;  %vm1408_vm6 = vcmask 998400  }
 0x5f0   :  { %v2519_v38 = vadd.f32 %v1274_v24, %v1255_v54  ;;  %v683_v23 = vsel %vm147_vm5, %v2714_v3, %v2720_v10  ;;  %v689_v0 = vadd.f32 %v2720_v10, %v665_v56  ;;  %v783_v31 = vadd.f32 %v778_v63, %v759_v26 }
 0x5f1   :  { %v688_v33 = vadd.f32 %v683_v23, %v664_v32  ;;  %v755_v24 = vsel %vm216_vm8, %v2222_v5, %v2224_v25  ;;  %vm1219_vm5 = vcmask 1006592  }
 0x5f2   :  { %v799_v50 = vpop.permute.xlu1 %798  ;;  %v2521_v47 = vpop.permute.xlu0 %963  ;;  %v713_v11 = vadd.f32 %v2214_v43, %v689_v0  ;;  %v779_v43 = vsel %vm239_vm9, %v2491_v2, %v2488_v28 }
 0x5f3   :  { %v802_v48 = vsel %vm262_vm10, %v797_v45, %v799_v50  ;;  %v712_v45 = vadd.f32 %v707_v16, %v688_v33  ;;  %v803_v19 = vsel %vm262_vm10, %v799_v50, %v801_v17 }
 0x5f4   :  { %v807_v46 = vadd.f32 %v802_v48, %v783_v31  ;;  %v737_v9 = vadd.f32 %v2218_v15, %v713_v11 }
 0x5f5   :  { %v736_v58 = vadd.f32 %v731_v13, %v712_v45 }
 0x5f6   :  { %v962_v12 = vpop.permute.xlu1 %961  ;;  %v2531_v51 = vpop.permute.xlu0 %1126  ;;  %v761_v18 = vadd.f32 %v2224_v25, %v737_v9 }
 0x5f7   :  { %v760_v7 = vadd.f32 %v755_v24, %v736_v58  ;;  %v967_v23 = vsel %vm239_vm9, %v962_v12, %v2521_v47 }
 0x5f8   :  { %v785_v15 = vadd.f32 %v2488_v28, %v761_v18  ;;  %v943_v28 = vsel %vm216_vm8, %v2495_v52, %v2493_v59 }
 0x5f9   :  { %v784_v42 = vadd.f32 %v779_v43, %v760_v7  ;;  %v948_v26 = vadd.f32 %v943_v28, %v2478_v20 }
 0x5fa   :  { %v2539_v29 = vpop.permute.xlu1 %965  ;;  %v2541_v41 = vpop.permute.xlu0 %1130  ;;  %v809_v5 = vadd.f32 %v801_v17, %v785_v15  ;;  %v944_v17 = vsel %vm216_vm8, %v2493_v59, %v2497_v62  ;;  %v950_v59 = vadd.f32 %v2497_v62, %v2481_v44 }
 0x5fb   :  { %v808_v36 = vadd.f32 %v803_v19, %v784_v42  ;;  %v968_v32 = vsel %vm239_vm9, %v2521_v47, %v2539_v29  ;;  %v949_v48 = vadd.f32 %v944_v17, %v2483_v27  ;;  %v972_v31 = vadd.f32 %v967_v23, %v948_v26 }
 0x5fc   :  { %v974_v47 = vadd.f32 %v2539_v29, %v950_v59 }
 0x5fd   :  { %v973_v11 = vadd.f32 %v968_v32, %v949_v48 }
 0x5fe   :  { %v2553_v53 = vpop.permute.xlu1 %1128  ;;  %v2555_v39 = vpop.permute.xlu0 %1293 }
 0x5ff   :  { %v1132_v44 = vsel %vm216_vm8, %v2531_v51, %v2553_v53  ;;  %v1133_v29 = vsel %vm216_vm8, %v2553_v53, %v2541_v41 }
 0x600   :  { %v1137_v7 = vadd.f32 %v1132_v44, %v2505_v37  ;;  %v1138_v15 = vadd.f32 %v1133_v29, %v2507_v1  ;;  %v1139_v37 = vadd.f32 %v2541_v41, %v2499_v8 }
 0x602   :  { %v2565_v34 = vpop.permute.xlu1 %1291  ;;  %v821_v54 = vpop.permute.xlu0 %820 }
 0x603   :  { %v829_v3 = vmul.f32 %v821_v54, %v807_v46  ;;  %v1297_v51 = vsel %vm193_vm7, %v2565_v34, %v2555_v39 }
 0x604   :  { %v1302_v1 = vadd.f32 %v1297_v51, %v2514_v61 }
 0x605   :  { %835 = vrot.lane.b32.xlu0 %v829_v3, %s1690_s18 }
 0x606   :  { %v2575_v49 = vpop.permute.xlu1 %1295  ;;  %v986_v14 = vpop.permute.xlu0 %985 }
 0x607   :  { %v1298_v26 = vsel %vm193_vm7, %v2555_v39, %v2575_v49  ;;  %v1304_v61 = vadd.f32 %v2575_v49, %v2517_v35 }
 0x60a   :  { %v823_v60 = vpop.permute.xlu1 %822  ;;  %v990_v25 = vpop.permute.xlu0 %989 }
 0x60b   :  { %v825_v40 = vsel %vm824_vm15, %v821_v54, %v823_v60  ;;  %v831_v6 = vmul.f32 %v823_v60, %v809_v5  ;;  %v998_v9 = vadd.f32 %v990_v25, %v974_v47 }
 0x60c   :  { %v830_v57 = vmul.f32 %v825_v40, %v808_v36 }
 0x60d   :  { %839 = vrot.lane.b32.xlu0 %v831_v6, %s1690_s18 }
 0x60e   :  { %v988_v2 = vpop.permute.xlu1 %987  ;;  %837 = vrot.lane.b32.xlu1 %v830_v57, %s1690_s18  ;;  %v1153_v21 = vpop.permute.xlu0 %1152 }
 0x60f   :  { %v991_v52 = vsel %vm262_vm10, %v986_v14, %v988_v2  ;;  %v992_v33 = vsel %vm262_vm10, %v988_v2, %v990_v25 }
 0x610   :  { %v996_v12 = vadd.f32 %v991_v52, %v972_v31  ;;  %v997_v20 = vadd.f32 %v992_v33, %v973_v11 }
 0x612   :  { %v1151_v63 = vpop.permute.xlu1 %1150  ;;  %v1316_v56 = vpop.permute.xlu0 %1315 }
 0x613   :  { %v1156_v43 = vsel %vm239_vm9, %v1151_v63, %v1153_v21 }
 0x614   :  { %v1161_v36 = vadd.f32 %v1156_v43, %v1137_v7 }
 0x616   :  { %v1155_v50 = vpop.permute.xlu1 %1154  ;;  %v2582_v10 = vpop.permute.xlu0 %1319 }
 0x617   :  { %v1157_v14 = vsel %vm239_vm9, %v1153_v21, %v1155_v50  ;;  %v1163_v2 = vadd.f32 %v1155_v50, %v1139_v37  ;;  %v1328_v39 = vadd.f32 %v2582_v10, %v1304_v61 }
 0x618   :  { %v1162_v53 = vadd.f32 %v1157_v14, %v1138_v15 }
 0x61a   :  { %v1318_v0 = vpop.permute.xlu1 %1317  ;;  %v1012_v16 = vpop.permute.xlu0 %1011 }
 0x61b   :  { %v1020_v58 = vmul.f32 %v1012_v16, %v998_v9  ;;  %v1321_v25 = vsel %vm216_vm8, %v1316_v56, %v1318_v0  ;;  %v1322_v50 = vsel %vm216_vm8, %v1318_v0, %v2582_v10 }
 0x61c   :  { %v1326_v17 = vadd.f32 %v1321_v25, %v1302_v1 }
 0x61e   :  { %v1010_v13 = vpop.permute.xlu1 %1009  ;;  %v1177_v46 = vpop.permute.xlu0 %1176 }
 0x61f   :  { %v1014_v45 = vsel %vm1013_vm0, %v1010_v13, %v1012_v16  ;;  %v1018_v27 = vmul.f32 %v1010_v13, %v996_v12  ;;  %v1303_v16 = vadd.f32 %v1298_v26, %v2519_v38 }
 0x620   :  { %v1019_v54 = vmul.f32 %v1014_v45, %v997_v20 }
 0x621   :  { %1024 = vrot.lane.b32.xlu1 %v1018_v27, %s1691_s19  ;;  %v1327_v11 = vadd.f32 %v1322_v50, %v1303_v16 }
 0x622   :  { %v1175_v24 = vpop.permute.xlu1 %1174  ;;  %1026 = vrot.lane.b32.xlu0 %v1019_v54, %s1691_s19  ;;  %v1340_v3 = vpop.permute.xlu0 %1339 }
 0x623   :  { %v1180_v19 = vsel %vm262_vm10, %v1175_v24, %v1177_v46 }
 0x624   :  { %v1185_v40 = vadd.f32 %v1180_v19, %v1161_v36 }
 0x625   :  { %1028 = vrot.lane.b32.xlu1 %v1020_v58, %s1691_s19 }
 0x626   :  { %v1179_v62 = vpop.permute.xlu1 %1178  ;;  %v1344_v18 = vpop.permute.xlu0 %1343 }
 0x627   :  { %v1181_v60 = vsel %vm262_vm10, %v1177_v46, %v1179_v62  ;;  %v1187_v8 = vadd.f32 %v1179_v62, %v1163_v2  ;;  %v1352_v20 = vadd.f32 %v1344_v18, %v1328_v39 }
 0x628   :  { %v1186_v6 = vadd.f32 %v1181_v60, %v1162_v53 }
 0x62a   :  { %v1342_v42 = vpop.permute.xlu1 %1341  ;;  %v1201_v5 = vpop.permute.xlu0 %1200 }
 0x62b   :  { %v1345_v21 = vsel %vm239_vm9, %v1340_v3, %v1342_v42  ;;  %v1209_v32 = vmul.f32 %v1201_v5, %v1187_v8  ;;  %v1346_v33 = vsel %vm239_vm9, %v1342_v42, %v1344_v18 }
 0x62c   :  { %v1350_v41 = vadd.f32 %v1345_v21, %v1326_v17  ;;  %v1351_v49 = vadd.f32 %v1346_v33, %v1327_v11 }
 0x62e   :  { %v1199_v57 = vpop.permute.xlu1 %1198  ;;  %v1366_v28 = vpop.permute.xlu0 %1365 }
 0x62f   :  { %v1203_v63 = vsel %vm1202_vm1, %v1199_v57, %v1201_v5  ;;  %v1207_v34 = vmul.f32 %v1199_v57, %v1185_v40 }
 0x630   :  { %v1208_v23 = vmul.f32 %v1203_v63, %v1186_v6 }
 0x631   :  { %1213 = vrot.lane.b32.xlu0 %v1207_v34, %s1692_s20 }
 0x632   :  { %v1364_v56 = vpop.permute.xlu1 %1363  ;;  %1215 = vrot.lane.b32.xlu1 %v1208_v23, %s1692_s20  ;;  %v1388_v52 = vpop.permute.xlu0 %1387 }
 0x633   :  { %v1369_v48 = vsel %vm262_vm10, %v1364_v56, %v1366_v28 }
 0x634   :  { %v1374_v31 = vadd.f32 %v1369_v48, %v1350_v41 }
 0x635   :  { %1217 = vrot.lane.b32.xlu0 %v1209_v32, %s1692_s20  ;;  %v1694_v32 = vmov 1966171168  }
 0x636   :  { %v1396_v59 = vmul.f32 %v1388_v52, %v1374_v31  ;;  %v1368_v12 = vpop.permute.xlu1 %1367  ;;  %v1443_v48 = vunpack.c.l.s4 %v1694_v32 }
 0x637   :  { %v1370_v35 = vsel %vm262_vm10, %v1366_v28, %v1368_v12  ;;  %v1376_v0 = vadd.f32 %v1368_v12, %v1352_v20 }
 0x638   :  { %1402 = vrot.lane.b32.xlu1 %v1396_v59, %s1693_s21  ;;  %v1375_v13 = vadd.f32 %v1370_v35, %v1351_v49  ;;  %v2721_v49 = vld [vmem:[#allocation4_spill] sm:$0xff] }
 0x63a   :  { %v1390_v46 = vpop.permute.xlu1 %1389 }
 0x63b   :  { %v1392_v38 = vsel %vm1391_vm2, %v1388_v52, %v1390_v46  ;;  %v1398_v47 = vmul.f32 %v1390_v46, %v1376_v0  ;;  %v1444_v52 = vunpack.c.0.s8 %v1443_v48 }
 0x63c   :  { %v1397_v45 = vmul.f32 %v1392_v38, %v1375_v13 }
 0x63d   :  { %1406 = vrot.lane.b32.xlu1 %v1398_v47, %s1693_s21  ;;  %v1447_v31 = vsub.s32 %v1444_v52, %v2706_v30  ;;  %v1624_v30 = vld [vmem:[%s2654_s0] sm:$0xff] }
 0x63e   :  { %1404 = vrot.lane.b32.xlu0 %v1397_v45, %s1693_s21 }
 0x677   :  { %v836_v10 = vpop.permute.xlu0 %835 }
 0x67f   :  { %v840_v54 = vpop.permute.xlu0 %839 }
 0x680   :  { %v838_v27 = vpop.permute.xlu1 %837 }
 0x681   :  { %v842_v62 = vsel %vm841_vm3, %v836_v10, %v838_v27  ;;  %v843_v18 = vsel %vm841_vm3, %v838_v27, %v840_v54  ;;  %v1625_v10 = vld [vmem:[%s2654_s0 + $0x8] sm:$0xff] }
 0x682   :  { %v846_v15 = vadd.f32 %v842_v62, %v2391_v4  ;;  %v847_v19 = vadd.f32 %v843_v18, %v2367_v22  ;;  %v1424_v4 = vstv %s2656_s3 }
 0x693   :  { %v1025_v9 = vpop.permute.xlu1 %1024 }
 0x694   :  { %v1027_v24 = vpop.permute.xlu0 %1026 }
 0x695   :  { %v1031_v7 = vsel %vm1030_vm4, %v1025_v9, %v1027_v24 }
 0x696   :  { %v1035_v51 = vadd.f32 %v1031_v7, %v846_v15 }
 0x697   :  { %v1029_v3 = vpop.permute.xlu1 %1028 }
 0x698   :  { %v1032_v14 = vsel %vm1030_vm4, %v1027_v24, %v1029_v3 }
 0x699   :  { %v1036_v36 = vadd.f32 %v1032_v14, %v847_v19 }
 0x6a3   :  { %v1214_v58 = vpop.permute.xlu0 %1213 }
 0x6a4   :  { %v1216_v44 = vpop.permute.xlu1 %1215 }
 0x6a5   :  { %v1220_v42 = vsel %vm1219_vm5, %v1214_v58, %v1216_v44 }
 0x6a6   :  { %v1224_v53 = vadd.f32 %v1220_v42, %v1035_v51 }
 0x6a7   :  { %v1218_v29 = vpop.permute.xlu0 %1217 }
 0x6a8   :  { %v1221_v5 = vsel %vm1219_vm5, %v1216_v44, %v1218_v29 }
 0x6a9   :  { %v1225_v37 = vadd.f32 %v1221_v5, %v1036_v36 }
 0x6aa   :  { %v1403_v43 = vpop.permute.xlu1 %1402 }
 0x6af   :  { %v1407_v60 = vpop.permute.xlu1 %1406 }
 0x6b0   :  { %v1405_v25 = vpop.permute.xlu0 %1404 }
 0x6b1   :  { %v1409_v40 = vsel %vm1408_vm6, %v1403_v43, %v1405_v25  ;;  %v1410_v1 = vsel %vm1408_vm6, %v1405_v25, %v1407_v60 }
 0x6b2   :  { %v1413_v6 = vadd.f32 %v1409_v40, %v1224_v53  ;;  %v1414_v57 = vadd.f32 %v1410_v1, %v1225_v37 }
 0x6b4   :  { %v1417_v2 = vrot.slane %v1413_v6, 2  ;;  %v1418_v21 = vrot.slane %v1414_v57, 2 }
 0x6b6   :  { %v1421_v22 = vadd.f32 %v1417_v2, %v1413_v6  ;;  %v1422_v63 = vadd.f32 %v1418_v21, %v1414_v57 }
 0x6b8   :  { %v1425_v34 = vadd.f32 %v1424_v4, %v1421_v22  ;;  %v1426_v28 = vadd.f32 %v1424_v4, %v1422_v63 }
 0x6ba   :  { %v1427_v17 = vsub.f32 0.0, %v1425_v34  ;;  %v1428_v23 = vsub.f32 0.0, %v1426_v28 }
 0x6bc   :  { %v1429_v26 = vmul.f32 1.442695, %v1427_v17  ;;  %v1431_v8 = vmul.f32 1.442695, %v1428_v23 }
 0x6be   :  { %1613 = vpow2.f32 %v1429_v26 }
 0x6bf   :  { %1615 = vpow2.f32 %v1431_v8 }
 0x6c8   :  { %v1614_v41 = vpop.eup %1613 }
 0x6c9   :  { %v1616_v56 = vpop.eup %1615  ;;  %v1433_v61 = vadd.f32 1.0, %v1614_v41 }
 0x6ca   :  { %v1434_v50 = vadd.f32 1.0, %v1616_v56 }
 0x6cb   :  { %1617 = vrcp.f32 %v1433_v61 }
 0x6cc   :  { %1619 = vrcp.f32 %v1434_v50 }
 0x6d5   :  { %v1618_v16 = vpop.eup %1617 }
 0x6d6   :  { %v1620_v39 = vpop.eup %1619 }
 0x6d7   :  { %v1441_v33 = vcombine.low %v1618_v16, %v1620_v39 }
 0x6d9   :  { %v1448_v11 = vrot.slane %v1441_v33, %v1447_v31 }
 0x6db   :  { %v1449_v59 = vcombine.high %v1448_v11, %v1448_v11  ;;  %v1456_v12 = vrot.slane %v1448_v11, %v1447_v31 }
 0x6dd   :  { %v1463_v20 = vrot.slane %v1449_v59, %v1447_v31  ;;  %v1467_v35 = vrot.slane %v1456_v12, %v2321_v55  ;;  %v1471_v0 = vrot.slane %v1456_v12, %v2721_v49 }
 0x6df   :  { %v1475_v13 = vrot.slane %v1463_v20, %v2321_v55  ;;  %v1479_v46 = vrot.slane %v1463_v20, %v2721_v49  ;;  %v1480_v38 = vcombine.low %v1467_v35, %v1471_v0 }
 0x6e1   :  { %v1481_v47 = vcombine.low %v1475_v13, %v1479_v46  ;;  %v1484_v45 = vmul.f32 %v1624_v30, %v1480_v38 }
 0x6e3   :  { %v1485_v27 = vmul.f32 %v1625_v10, %v1481_v47  ;;  %1486 = vst [vmem:[%s2657_s4] sm:$0xff] %v1484_v45 }
 0x6e5   :  { %1487 = vst [vmem:[%s2657_s4 + $0x8] sm:$0xff] %v1485_v27 }

</bundles_post_ra>
